<compile_context>
chip_gen: v5e
topology: v5e:2x2
jax: 0.10.0
libtpu: 0.0.40
codegen_flags: <defaults>
</compile_context>

<pallas_src>
import functools

import jax
import jax.numpy as jnp
import numpy as np
from jax.experimental import pallas as pl
from jax.experimental.pallas import tpu as pltpu


# ----------------------------------------------------------------------------
# tiling helpers
# ----------------------------------------------------------------------------
def _round_up(n, m):
    return ((n + m - 1) // m) * m


def _choose_tiling(rows, max_tm=4096, min_steps=2):
    """Row tile: big tiles amortise the ~0.35us/step pipeline overhead; for
    larger inputs keep >= min_steps grid steps so the 'parallel' row axis can
    shard across the two TensorCores of a v7x megacore."""
    if rows <= 256:
        tm = _round_up(rows, 8)
    else:
        steps = max(min_steps, -(-rows // max_tm))
        tm = _round_up(-(-rows // steps), 8)
    return tm, _round_up(rows, tm)


def _pad_rows(x, rows_padded):
    r = x.shape[0]
    if rows_padded == r:
        return x
    return jnp.pad(x, ((0, rows_padded - r), (0, 0)))


# ----------------------------------------------------------------------------
# Pallas kernels
# ----------------------------------------------------------------------------
def _linear_kernel(x_ref, w_ref, b_ref, o_ref):
    # y = x @ W + b   (input_proj: 1x1 conv over channels == per-pixel Linear)
    o_ref[...] = (
        jnp.dot(x_ref[...], w_ref[...], preferred_element_type=jnp.float32)
        + b_ref[...]
    )


def linear_pallas(x, w, b, *, max_tm=4096):
    """x: (R, Din) f32, w: (Din, Dout), b: (1, Dout) -> (R, Dout).

    When Dout divides 128, `f = 128 // Dout` input rows are folded into one
    kernel row (wrapper-side reshape) and the weight is block-diagonalised, so
    the kernel output is a lane-dense 128-wide slab with unmasked stores.
    """
    R, Din = x.shape
    Dout = w.shape[1]
    f = 128 // Dout if (Dout < 128 and 128 % Dout == 0) else 1

    Rf = _round_up(R, f)
    xw = _pad_rows(x, Rf)
    if f > 1:
        xw = xw.reshape(Rf // f, f * Din)                    # row-major: free
        w_eff = jnp.kron(jnp.eye(f, dtype=w.dtype), w)       # block-diagonal
        b_eff = jnp.tile(b, (1, f))
    else:
        w_eff, b_eff = w, b

    rows = xw.shape[0]
    Din_eff, Dout_eff = w_eff.shape
    tm, Rp = _choose_tiling(rows, max_tm)
    xp = _pad_rows(xw, Rp)

    out = pl.pallas_call(
        _linear_kernel,
        out_shape=jax.ShapeDtypeStruct((Rp, Dout_eff), jnp.float32),
        grid_spec=pltpu.PrefetchScalarGridSpec(
            num_scalar_prefetch=0,
            grid=(Rp // tm,),
            in_specs=[
                pl.BlockSpec((tm, Din_eff), lambda i: (i, 0)),
                pl.BlockSpec((Din_eff, Dout_eff), lambda i: (0, 0)),
                pl.BlockSpec((1, Dout_eff), lambda i: (0, 0)),
            ],
            out_specs=pl.BlockSpec((tm, Dout_eff), lambda i: (i, 0)),
        ),
        compiler_params=pltpu.CompilerParams(dimension_semantics=("parallel",)),
    )(xp, w_eff, b_eff)

    out = out[:rows]
    if f > 1:
        out = out.reshape(Rf, Dout)
    return out[:R]


def _heads_kernel(x_ref, wx_ref, bx_ref, bb_w2_ref, bb_b2_ref, bb_w3_ref,
                  bb_b3_ref, iou_w2_ref, iou_b2_ref, iou_w3b_ref, wic_ref,
                  out_ref, *, D, NC):
    """Fused class_embed + bbox_embed MLP + iou_embed MLP.

      wx (D,128)     = [ bb_w1 (D) | iou_w1h (D) | wc (NC) | 0-pad ]
      bx (1,128)     = [ bb_b1     | iou_b1      | bc      | 0-pad ]
      iou_w3b (1,D+1)= [ iou_w3^T (D) | iou_b3 ]
      wic (4,D)      = iou_w1c (coord half of the split iou layer-1 weight)
    Output (tm, 8)   = [ logits (NC) | boxes (4) | iou (1) | 0-pad ].
    """
    dot = lambda a, b: jnp.dot(a, b, preferred_element_type=jnp.float32)
    relu, sig = jax.nn.relu, jax.nn.sigmoid

    x = x_ref[...]

    # One MXU push of x covers class_embed, bbox layer-1 and iou layer-1 (hs part).
    y = dot(x, wx_ref[...]) + bx_ref[...]                    # (tm, 128)
    h1 = relu(y[:, 0:D])                                     # bbox layer-1
    g1_pre = y[:, D:2 * D]                                   # x @ iou_w1h + iou_b1
    logits = y[:, 2 * D:2 * D + NC]                          # class_embed

    # bbox_embed layers 2, 3 (+ sigmoid)
    h2 = relu(dot(h1, bb_w2_ref[...]) + bb_b2_ref[...])
    coord = sig(dot(h2, bb_w3_ref[...]) + bb_b3_ref[...])

    # iou layer-1 coord half: K=4 -> four VPU broadcast-FMAs, no MXU push.
    wic = wic_ref[...]
    g1c = (coord[:, 0:1] * wic[0:1, :] + coord[:, 1:2] * wic[1:2, :]
           + coord[:, 2:3] * wic[2:3, :] + coord[:, 3:4] * wic[3:4, :])
    g1 = relu(g1_pre + g1c)
    g2 = relu(dot(g1, iou_w2_ref[...]) + iou_b2_ref[...])

    # iou layer-3 (N=1): elementwise multiply + lane reduction (XLU), no MXU push.
    w3b = iou_w3b_ref[...]
    iou = sig(jnp.sum(g2 * w3b[:, 0:D], axis=-1, keepdims=True)
              + w3b[:, D:D + 1])

    # Narrow packed output: write the three sub-slices directly.
    out_ref[:, 0:NC] = logits
    out_ref[:, NC:NC + 4] = coord
    out_ref[:, NC + 4:NC + 5] = iou
    nlive = NC + 5
    if out_ref.shape[1] > nlive:
        out_ref[:, nlive:] = jnp.zeros(
            (x.shape[0], out_ref.shape[1] - nlive), jnp.float32)


def _pack_first_layer(p):
    wx = jnp.concatenate([p["bb_w1"], p["iou_w1h"], p["wc"]], axis=1)
    bx = jnp.concatenate([p["bb_b1"], p["iou_b1"], p["bc"]], axis=1)
    pad = 128 - wx.shape[1]
    return jnp.pad(wx, ((0, 0), (0, pad))), jnp.pad(bx, ((0, 0), (0, pad)))


def heads_pallas(hs_flat, p, *, max_tm=4096):
    """hs_flat: (R, D) f32 -> (logits (R,NC), boxes (R,4), iou (R,1))."""
    R, D = hs_flat.shape
    NC = p["wc"].shape[1]
    # TODO(synk): the packed first layer needs 2*D + NC <= 128 lanes; that holds
    # for the demo hidden=32 but NOT for real TransT (hidden_dim=256), which
    # needs a K/N-tiled per-branch layout instead of this single-vreg packing.
    assert 2 * D + NC <= 128, (D, NC)
    PW = _round_up(NC + 5, 8)                     # packed output width (8 lanes)

    wx, bx = _pack_first_layer(p)
    iou_w3b = jnp.concatenate([p["iou_w3"].T, p["iou_b3"]], axis=1)  # (1, D+1)

    tm, Rp = _choose_tiling(R, max_tm)
    x = _pad_rows(hs_flat, Rp)

    packed = pl.pallas_call(
        functools.partial(_heads_kernel, D=D, NC=NC),
        out_shape=jax.ShapeDtypeStruct((Rp, PW), jnp.float32),
        grid_spec=pltpu.PrefetchScalarGridSpec(
            num_scalar_prefetch=0,
            grid=(Rp // tm,),
            in_specs=[
                pl.BlockSpec((tm, D), lambda i: (i, 0)),        # hs rows
                pl.BlockSpec((D, 128), lambda i: (0, 0)),       # packed layer-1 W
                pl.BlockSpec((1, 128), lambda i: (0, 0)),       # packed layer-1 b
                pl.BlockSpec((D, D), lambda i: (0, 0)),         # bb_w2
                pl.BlockSpec((1, D), lambda i: (0, 0)),         # bb_b2
                pl.BlockSpec((D, 4), lambda i: (0, 0)),         # bb_w3
                pl.BlockSpec((1, 4), lambda i: (0, 0)),         # bb_b3
                pl.BlockSpec((D, D), lambda i: (0, 0)),         # iou_w2
                pl.BlockSpec((1, D), lambda i: (0, 0)),         # iou_b2
                pl.BlockSpec((1, D + 1), lambda i: (0, 0)),     # iou_w3^T | iou_b3
                pl.BlockSpec((4, D), lambda i: (0, 0)),         # iou_w1c
            ],
            out_specs=pl.BlockSpec((tm, PW), lambda i: (i, 0)),
        ),
        compiler_params=pltpu.CompilerParams(dimension_semantics=("parallel",)),
    )(x, wx, bx, p["bb_w2"], p["bb_b2"], p["bb_w3"], p["bb_b3"],
      p["iou_w2"], p["iou_b2"], iou_w3b, p["iou_w1c"])

    logits = packed[:R, 0:NC]
    boxes = packed[:R, NC:NC + 4]
    iou = packed[:R, NC + 4:NC + 5]
    return logits, boxes, iou


# ----------------------------------------------------------------------------
# Parameter init (deterministic, nn.Linear-style uniform(-1/sqrt(fan_in), ...))
# ----------------------------------------------------------------------------
def _linear_init(key, fan_in, fan_out):
    kw, kb = jax.random.split(key)
    bound = 1.0 / np.sqrt(fan_in)
    w = jax.random.uniform(kw, (fan_in, fan_out), jnp.float32, -bound, bound)
    b = jax.random.uniform(kb, (1, fan_out), jnp.float32, -bound, bound)
    return w, b


def make_params(key, *, backbone_c=8, hidden=32, num_classes=1):
    ks = jax.random.split(key, 10)
    p = {}
    # backbone stand-in channel projection (3 -> backbone_c)
    p["backbone_w"], p["backbone_b"] = _linear_init(ks[0], 3, backbone_c)
    # input_proj: Conv2d(backbone_c, hidden, kernel_size=1) == per-pixel Linear
    p["proj_w"], p["proj_b"] = _linear_init(ks[1], backbone_c, hidden)
    # class_embed: Linear(hidden, num_classes + 1)
    p["wc"], p["bc"] = _linear_init(ks[2], hidden, num_classes + 1)
    # bbox_embed: MLP(hidden, hidden, 4, 3)
    p["bb_w1"], p["bb_b1"] = _linear_init(ks[3], hidden, hidden)
    p["bb_w2"], p["bb_b2"] = _linear_init(ks[4], hidden, hidden)
    p["bb_w3"], p["bb_b3"] = _linear_init(ks[5], hidden, 4)
    # iou_embed: MLP(hidden + 4, hidden, 1, 3); first-layer weight split so the
    # torch.cat((hs, coord), 3) never has to materialise inside the kernel.
    wi1, p["iou_b1"] = _linear_init(ks[6], hidden + 4, hidden)
    p["iou_w1h"], p["iou_w1c"] = wi1[:hidden], wi1[hidden:]
    p["iou_w2"], p["iou_b2"] = _linear_init(ks[7], hidden, hidden)
    p["iou_w3"], p["iou_b3"] = _linear_init(ks[8], hidden, 1)
    return p


# ----------------------------------------------------------------------------
# TransTiouh forward
# ----------------------------------------------------------------------------
def _backbone_standin(x_nchw, p):
    # TODO(synk): real module uses a frozen ResNet backbone + positional encodings
    # (external pretrained `transt.backbone`); stand-in = 2x2 avg-pool + 1x1 proj.
    b, c, h, w = x_nchw.shape
    pooled = x_nchw.reshape(b, c, h // 2, 2, w // 2, 2).mean(axis=(3, 5))
    feat = jnp.einsum("bchw,cd->bdhw", pooled, p["backbone_w"])
    feat = feat + p["backbone_b"][0][None, :, None, None]
    return feat  # (B, backbone_c, H/2, W/2), NCHW


def _featurefusion_standin(search_tok, template_tok):
    # TODO(synk): real module is the TransT cross-attention featurefusion
    # transformer (external `transt.featurefusion_network`); stand-in adds the
    # template context (mean token) to each search token.  Once this is a real
    # Pallas kernel, input_proj + fusion + heads can live in one fused kernel so
    # the (R, hidden) intermediate never round-trips HBM.
    ctx = template_tok.mean(axis=1, keepdims=True)            # (B, 1, D)
    hs = search_tok + ctx                                     # (B, Q, D)
    return hs[None]                                           # (L=1, B, Q, D)


def transt_iouh_forward(params, search, templates):
    """search: (B, 3, Hs, Ws) NCHW; templates: (B, n_t, 3, Ht, Wt) NCHW."""
    hidden = params["proj_w"].shape[1]
    nc = params["wc"].shape[1]

    # ---- backbone (stand-in) on both branches ----
    feat_s = _backbone_standin(search, params)                # (B, Cb, h, w)
    B, Cb, h, w = feat_s.shape
    rows_s = jnp.transpose(feat_s, (0, 2, 3, 1)).reshape(B * h * w, Cb)

    bs, n_t, c, ht, wt = templates.shape
    feat_t = _backbone_standin(templates.reshape(bs * n_t, c, ht, wt), params)
    _, _, h_t, w_t = feat_t.shape
    rows_t = jnp.transpose(feat_t, (0, 2, 3, 1)).reshape(bs * n_t * h_t * w_t, Cb)

    # ---- input_proj (Pallas 1x1 conv): ONE call over search + template rows ----
    n_s = rows_s.shape[0]
    proj = linear_pallas(jnp.concatenate([rows_s, rows_t], axis=0),
                         params["proj_w"], params["proj_b"])
    src_search = proj[:n_s].reshape(B, h * w, hidden)                    # (B, Q, D)
    src_templates = proj[n_s:].reshape(bs, n_t * h_t * w_t, hidden)

    # ---- feature fusion (stand-in) ----
    hs = _featurefusion_standin(src_search, src_templates)   # (L, B, Q, D)
    L, _, Q, D = hs.shape

    # ---- fused heads: class_embed / bbox_embed.sigmoid / iou_embed(cat).sigmoid ----
    hs_flat = hs.reshape(L * B * Q, D)
    logits, boxes, iou = heads_pallas(hs_flat, params)
    logits = logits.reshape(L, B, Q, nc)
    boxes = boxes.reshape(L, B, Q, 4)
    iou = iou.reshape(L, B, Q, 1)

    return {
        "pred_logits": logits[-1],   # (B, Q, num_classes + 1)
        "pred_boxes": boxes[-1],     # (B, Q, 4)
        "pred_iouh": iou[-1],        # (B, Q, 1)
    }, hs


def _heads_reference(hs_flat, p):
    """Plain-JAX reference of the head math for a correctness check."""
    relu, sig = jax.nn.relu, jax.nn.sigmoid
    logits = hs_flat @ p["wc"] + p["bc"]
    h = relu(hs_flat @ p["bb_w1"] + p["bb_b1"])
    h = relu(h @ p["bb_w2"] + p["bb_b2"])
    coord = sig(h @ p["bb_w3"] + p["bb_b3"])
    cat = jnp.concatenate([hs_flat, coord], axis=-1)
    wi1 = jnp.concatenate([p["iou_w1h"], p["iou_w1c"]], axis=0)
    g = relu(cat @ wi1 + p["iou_b1"])
    g = relu(g @ p["iou_w2"] + p["iou_b2"])
    iou = sig(g @ p["iou_w3"] + p["iou_b3"])
    return logits, coord, iou


if __name__ == "__main__":
    key = jax.random.PRNGKey(0)
    kp, ks, kt = jax.random.split(key, 3)

    params = make_params(kp, backbone_c=8, hidden=32, num_classes=1)

    # Small deterministic inputs (NCHW, matching the PyTorch convention).
    search = jax.random.normal(ks, (2, 3, 16, 16), jnp.float32)       # B=2
    templates = jax.random.normal(kt, (2, 2, 3, 8, 8), jnp.float32)   # n_t=2

    out, hs = jax.jit(transt_iouh_forward)(params, search, templates)
    jax.block_until_ready(out)

    # Sanity: shapes match the PyTorch module's contract.
    assert out["pred_logits"].shape == (2, 64, 2)
    assert out["pred_boxes"].shape == (2, 64, 4)
    assert out["pred_iouh"].shape == (2, 64, 1)

    # Verify the fused Pallas head kernel against a plain-JAX reference.
    L, B, Q, D = hs.shape
    ref_logits, ref_boxes, ref_iou = _heads_reference(hs.reshape(L * B * Q, D), params)
    np.testing.assert_allclose(out["pred_logits"], ref_logits.reshape(L, B, Q, 2)[-1],
                               rtol=1e-5, atol=1e-5)
    np.testing.assert_allclose(out["pred_boxes"], ref_boxes.reshape(L, B, Q, 4)[-1],
                               rtol=1e-5, atol=1e-5)
    np.testing.assert_allclose(out["pred_iouh"], ref_iou.reshape(L, B, Q, 1)[-1],
                               rtol=1e-5, atol=1e-5)

    # Verify the lane-dense-folded input_proj Pallas call against plain JAX
    # (103 rows: exercises both the 4-row fold padding and the tile padding).
    rows = jax.random.normal(key, (103, 8), jnp.float32)
    np.testing.assert_allclose(
        linear_pallas(rows, params["proj_w"], params["proj_b"]),
        rows @ params["proj_w"] + params["proj_b"], rtol=1e-5, atol=1e-5)

    print("KERNEL_OK")
</pallas_src>

<mosaic_0001>
module attributes {stable_mosaic.version = 11 : i64} {
  func.func @_linear_kernel(%arg0: i32, %arg1: memref<48x32xf32, #tpu.memory_space<vmem>>, %arg2: memref<32x128xf32, #tpu.memory_space<vmem>>, %arg3: memref<1x128xf32, #tpu.memory_space<vmem>>, %arg4: memref<48x128xf32, #tpu.memory_space<vmem>>) attributes {dimension_semantics = [#tpu.dimension_semantics<parallel>], iteration_bounds = array<i64: 1>, scalar_prefetch = 0 : i64, scratch_operands = 0 : i64, tpu.core_type = #tpu.core_type<tc>, window_params = [{transform_indices = @transform_0, window_bounds = array<i64: 48, 32>}, {pipeline_mode = #tpu.pipeline_mode<synchronous>, transform_indices = @transform_1, window_bounds = array<i64: 32, 128>}, {pipeline_mode = #tpu.pipeline_mode<synchronous>, transform_indices = @transform_2, window_bounds = array<i64: 1, 128>}, {transform_indices = @transform_3, window_bounds = array<i64: 48, 128>}]} {
    %c0 = arith.constant 0 : index
    %c0_0 = arith.constant 0 : index
    %0 = vector.load %arg1[%c0, %c0_0] : memref<48x32xf32, #tpu.memory_space<vmem>>, vector<48x32xf32>
    %c0_1 = arith.constant 0 : index
    %c0_2 = arith.constant 0 : index
    %1 = vector.load %arg2[%c0_1, %c0_2] : memref<32x128xf32, #tpu.memory_space<vmem>>, vector<32x128xf32>
    %cst = arith.constant dense<0.000000e+00> : vector<48x128xf32>
    %2 = tpu.matmul %0, %1, %cst {dimension_numbers = #tpu.dot_dimension_numbers<[1], [0], [0], [1], [0, 0, 1, 1], [], []>} : vector<48x32xf32>, vector<32x128xf32>, vector<48x128xf32> -> vector<48x128xf32>
    %c0_3 = arith.constant 0 : index
    %c0_4 = arith.constant 0 : index
    %3 = vector.load %arg3[%c0_3, %c0_4] : memref<1x128xf32, #tpu.memory_space<vmem>>, vector<1x128xf32>
    %4 = vector.broadcast %3 : vector<1x128xf32> to vector<48x128xf32>
    %5 = arith.addf %2, %4 : vector<48x128xf32>
    %c0_5 = arith.constant 0 : index
    %c0_6 = arith.constant 0 : index
    %6 = vector.load %arg4[%c0_5, %c0_6] : memref<48x128xf32, #tpu.memory_space<vmem>>, vector<48x128xf32>
    tpu.vector_store %arg4[%c0_5, %c0_6], %5 {strides = array<i32>} : memref<48x128xf32, #tpu.memory_space<vmem>>, vector<48x128xf32>,
    return
  }
  func.func @transform_0(%arg0: i32) -> (i32, i32) {
    %c0_i32 = arith.constant 0 : i32
    %c0_i32_0 = arith.constant 0 : i32
    return %arg0, %c0_i32 : i32, i32
  }
  func.func @transform_1(%arg0: i32) -> (i32, i32) {
    %c0_i32 = arith.constant 0 : i32
    %c0_i32_0 = arith.constant 0 : i32
    %c0_i32_1 = arith.constant 0 : i32
    return %c0_i32, %c0_i32_0 : i32, i32
  }
  func.func @transform_2(%arg0: i32) -> (i32, i32) {
    %c0_i32 = arith.constant 0 : i32
    %c0_i32_0 = arith.constant 0 : i32
    %c0_i32_1 = arith.constant 0 : i32
    return %c0_i32, %c0_i32_0 : i32, i32
  }
  func.func @transform_3(%arg0: i32) -> (i32, i32) {
    %c0_i32 = arith.constant 0 : i32
    %c0_i32_0 = arith.constant 0 : i32
    return %arg0, %c0_i32 : i32, i32
  }
}

module attributes {stable_mosaic.version = 11 : i64} {
  func.func @_heads_kernel(%arg0: i32, %arg1: memref<128x32xf32, #tpu.memory_space<vmem>>, %arg2: memref<32x128xf32, #tpu.memory_space<vmem>>, %arg3: memref<1x128xf32, #tpu.memory_space<vmem>>, %arg4: memref<32x32xf32, #tpu.memory_space<vmem>>, %arg5: memref<1x32xf32, #tpu.memory_space<vmem>>, %arg6: memref<32x4xf32, #tpu.memory_space<vmem>>, %arg7: memref<1x4xf32, #tpu.memory_space<vmem>>, %arg8: memref<32x32xf32, #tpu.memory_space<vmem>>, %arg9: memref<1x32xf32, #tpu.memory_space<vmem>>, %arg10: memref<1x33xf32, #tpu.memory_space<vmem>>, %arg11: memref<4x32xf32, #tpu.memory_space<vmem>>, %arg12: memref<128x8xf32, #tpu.memory_space<vmem>>) attributes {dimension_semantics = [#tpu.dimension_semantics<parallel>], iteration_bounds = array<i64: 1>, scalar_prefetch = 0 : i64, scratch_operands = 0 : i64, tpu.core_type = #tpu.core_type<tc>, window_params = [{transform_indices = @transform_0, window_bounds = array<i64: 128, 32>}, {pipeline_mode = #tpu.pipeline_mode<synchronous>, transform_indices = @transform_1, window_bounds = array<i64: 32, 128>}, {pipeline_mode = #tpu.pipeline_mode<synchronous>, transform_indices = @transform_2, window_bounds = array<i64: 1, 128>}, {pipeline_mode = #tpu.pipeline_mode<synchronous>, transform_indices = @transform_3, window_bounds = array<i64: 32, 32>}, {pipeline_mode = #tpu.pipeline_mode<synchronous>, transform_indices = @transform_4, window_bounds = array<i64: 1, 32>}, {pipeline_mode = #tpu.pipeline_mode<synchronous>, transform_indices = @transform_5, window_bounds = array<i64: 32, 4>}, {pipeline_mode = #tpu.pipeline_mode<synchronous>, transform_indices = @transform_6, window_bounds = array<i64: 1, 4>}, {pipeline_mode = #tpu.pipeline_mode<synchronous>, transform_indices = @transform_7, window_bounds = array<i64: 32, 32>}, {pipeline_mode = #tpu.pipeline_mode<synchronous>, transform_indices = @transform_8, window_bounds = array<i64: 1, 32>}, {pipeline_mode = #tpu.pipeline_mode<synchronous>, transform_indices = @transform_9, window_bounds = array<i64: 1, 33>}, {pipeline_mode = #tpu.pipeline_mode<synchronous>, transform_indices = @transform_10, window_bounds = array<i64: 4, 32>}, {transform_indices = @transform_11, window_bounds = array<i64: 128, 8>}]} {
    %c0 = arith.constant 0 : index
    %c0_0 = arith.constant 0 : index
    %0 = vector.load %arg1[%c0, %c0_0] : memref<128x32xf32, #tpu.memory_space<vmem>>, vector<128x32xf32>
    %c0_1 = arith.constant 0 : index
    %c0_2 = arith.constant 0 : index
    %1 = vector.load %arg2[%c0_1, %c0_2] : memref<32x128xf32, #tpu.memory_space<vmem>>, vector<32x128xf32>
    %cst = arith.constant dense<0.000000e+00> : vector<128x128xf32>
    %2 = tpu.matmul %0, %1, %cst {dimension_numbers = #tpu.dot_dimension_numbers<[1], [0], [0], [1], [0, 0, 1, 1], [], []>} : vector<128x32xf32>, vector<32x128xf32>, vector<128x128xf32> -> vector<128x128xf32>
    %c0_3 = arith.constant 0 : index
    %c0_4 = arith.constant 0 : index
    %3 = vector.load %arg3[%c0_3, %c0_4] : memref<1x128xf32, #tpu.memory_space<vmem>>, vector<1x128xf32>
    %4 = vector.broadcast %3 : vector<1x128xf32> to vector<128x128xf32>
    %5 = arith.addf %2, %4 : vector<128x128xf32>
    %6 = vector.extract_strided_slice %5 {offsets = [0, 0], sizes = [128, 32], strides = [1, 1]} : vector<128x128xf32> to vector<128x32xf32>
    %cst_5 = arith.constant 0.000000e+00 : f32
    %7 = vector.broadcast %cst_5 : f32 to vector<128x32xf32>
    %8 = arith.maximumf %6, %7 : vector<128x32xf32>
    %9 = vector.extract_strided_slice %5 {offsets = [0, 32], sizes = [128, 32], strides = [1, 1]} : vector<128x128xf32> to vector<128x32xf32>
    %10 = vector.extract_strided_slice %5 {offsets = [0, 64], sizes = [128, 2], strides = [1, 1]} : vector<128x128xf32> to vector<128x2xf32>
    %c0_6 = arith.constant 0 : index
    %c0_7 = arith.constant 0 : index
    %11 = vector.load %arg4[%c0_6, %c0_7] : memref<32x32xf32, #tpu.memory_space<vmem>>, vector<32x32xf32>
    %cst_8 = arith.constant dense<0.000000e+00> : vector<128x32xf32>
    %12 = tpu.matmul %8, %11, %cst_8 {dimension_numbers = #tpu.dot_dimension_numbers<[1], [0], [0], [1], [0, 0, 1, 1], [], []>} : vector<128x32xf32>, vector<32x32xf32>, vector<128x32xf32> -> vector<128x32xf32>
    %c0_9 = arith.constant 0 : index
    %c0_10 = arith.constant 0 : index
    %13 = vector.load %arg5[%c0_9, %c0_10] : memref<1x32xf32, #tpu.memory_space<vmem>>, vector<1x32xf32>
    %14 = vector.broadcast %13 : vector<1x32xf32> to vector<128x32xf32>
    %15 = arith.addf %12, %14 : vector<128x32xf32>
    %cst_11 = arith.constant 0.000000e+00 : f32
    %16 = vector.broadcast %cst_11 : f32 to vector<128x32xf32>
    %17 = arith.maximumf %15, %16 : vector<128x32xf32>
    %c0_12 = arith.constant 0 : index
    %c0_13 = arith.constant 0 : index
    %18 = vector.load %arg6[%c0_12, %c0_13] : memref<32x4xf32, #tpu.memory_space<vmem>>, vector<32x4xf32>
    %cst_14 = arith.constant dense<0.000000e+00> : vector<128x4xf32>
    %19 = tpu.matmul %17, %18, %cst_14 {dimension_numbers = #tpu.dot_dimension_numbers<[1], [0], [0], [1], [0, 0, 1, 1], [], []>} : vector<128x32xf32>, vector<32x4xf32>, vector<128x4xf32> -> vector<128x4xf32>
    %c0_15 = arith.constant 0 : index
    %c0_16 = arith.constant 0 : index
    %20 = vector.load %arg7[%c0_15, %c0_16] : memref<1x4xf32, #tpu.memory_space<vmem>>, vector<1x4xf32>
    %21 = vector.broadcast %20 : vector<1x4xf32> to vector<128x4xf32>
    %22 = arith.addf %19, %21 : vector<128x4xf32>
    %23 = arith.negf %22 : vector<128x4xf32>
    %24 = math.exp %23 : vector<128x4xf32>
    %cst_17 = arith.constant 1.000000e+00 : f32
    %25 = vector.broadcast %cst_17 : f32 to vector<128x4xf32>
    %26 = arith.addf %25, %24 : vector<128x4xf32>
    %27 = arith.divf %25, %26 : vector<128x4xf32>
    %c0_18 = arith.constant 0 : index
    %c0_19 = arith.constant 0 : index
    %28 = vector.load %arg11[%c0_18, %c0_19] : memref<4x32xf32, #tpu.memory_space<vmem>>, vector<4x32xf32>
    %29 = vector.extract_strided_slice %27 {offsets = [0, 0], sizes = [128, 1], strides = [1, 1]} : vector<128x4xf32> to vector<128x1xf32>
    %30 = vector.extract_strided_slice %28 {offsets = [0, 0], sizes = [1, 32], strides = [1, 1]} : vector<4x32xf32> to vector<1x32xf32>
    %31 = vector.broadcast %29 : vector<128x1xf32> to vector<128x32xf32>
    %32 = vector.broadcast %30 : vector<1x32xf32> to vector<128x32xf32>
    %33 = arith.mulf %31, %32 : vector<128x32xf32>
    %34 = vector.extract_strided_slice %27 {offsets = [0, 1], sizes = [128, 1], strides = [1, 1]} : vector<128x4xf32> to vector<128x1xf32>
    %35 = vector.extract_strided_slice %28 {offsets = [1, 0], sizes = [1, 32], strides = [1, 1]} : vector<4x32xf32> to vector<1x32xf32>
    %36 = vector.broadcast %34 : vector<128x1xf32> to vector<128x32xf32>
    %37 = vector.broadcast %35 : vector<1x32xf32> to vector<128x32xf32>
    %38 = arith.mulf %36, %37 : vector<128x32xf32>
    %39 = arith.addf %33, %38 : vector<128x32xf32>
    %40 = vector.extract_strided_slice %27 {offsets = [0, 2], sizes = [128, 1], strides = [1, 1]} : vector<128x4xf32> to vector<128x1xf32>
    %41 = vector.extract_strided_slice %28 {offsets = [2, 0], sizes = [1, 32], strides = [1, 1]} : vector<4x32xf32> to vector<1x32xf32>
    %42 = vector.broadcast %40 : vector<128x1xf32> to vector<128x32xf32>
    %43 = vector.broadcast %41 : vector<1x32xf32> to vector<128x32xf32>
    %44 = arith.mulf %42, %43 : vector<128x32xf32>
    %45 = arith.addf %39, %44 : vector<128x32xf32>
    %46 = vector.extract_strided_slice %27 {offsets = [0, 3], sizes = [128, 1], strides = [1, 1]} : vector<128x4xf32> to vector<128x1xf32>
    %47 = vector.extract_strided_slice %28 {offsets = [3, 0], sizes = [1, 32], strides = [1, 1]} : vector<4x32xf32> to vector<1x32xf32>
    %48 = vector.broadcast %46 : vector<128x1xf32> to vector<128x32xf32>
    %49 = vector.broadcast %47 : vector<1x32xf32> to vector<128x32xf32>
    %50 = arith.mulf %48, %49 : vector<128x32xf32>
    %51 = arith.addf %45, %50 : vector<128x32xf32>
    %52 = arith.addf %9, %51 : vector<128x32xf32>
    %cst_20 = arith.constant 0.000000e+00 : f32
    %53 = vector.broadcast %cst_20 : f32 to vector<128x32xf32>
    %54 = arith.maximumf %52, %53 : vector<128x32xf32>
    %c0_21 = arith.constant 0 : index
    %c0_22 = arith.constant 0 : index
    %55 = vector.load %arg8[%c0_21, %c0_22] : memref<32x32xf32, #tpu.memory_space<vmem>>, vector<32x32xf32>
    %cst_23 = arith.constant dense<0.000000e+00> : vector<128x32xf32>
    %56 = tpu.matmul %54, %55, %cst_23 {dimension_numbers = #tpu.dot_dimension_numbers<[1], [0], [0], [1], [0, 0, 1, 1], [], []>} : vector<128x32xf32>, vector<32x32xf32>, vector<128x32xf32> -> vector<128x32xf32>
    %c0_24 = arith.constant 0 : index
    %c0_25 = arith.constant 0 : index
    %57 = vector.load %arg9[%c0_24, %c0_25] : memref<1x32xf32, #tpu.memory_space<vmem>>, vector<1x32xf32>
    %58 = vector.broadcast %57 : vector<1x32xf32> to vector<128x32xf32>
    %59 = arith.addf %56, %58 : vector<128x32xf32>
    %cst_26 = arith.constant 0.000000e+00 : f32
    %60 = vector.broadcast %cst_26 : f32 to vector<128x32xf32>
    %61 = arith.maximumf %59, %60 : vector<128x32xf32>
    %c0_27 = arith.constant 0 : index
    %c0_28 = arith.constant 0 : index
    %62 = vector.load %arg10[%c0_27, %c0_28] : memref<1x33xf32, #tpu.memory_space<vmem>>, vector<1x33xf32>
    %63 = vector.extract_strided_slice %62 {offsets = [0, 0], sizes = [1, 32], strides = [1, 1]} : vector<1x33xf32> to vector<1x32xf32>
    %64 = vector.broadcast %63 : vector<1x32xf32> to vector<128x32xf32>
    %65 = arith.mulf %61, %64 : vector<128x32xf32>
    %cst_29 = arith.constant dense<0.000000e+00> : vector<128xf32>
    %66 = vector.multi_reduction <add>, %65, %cst_29 [1] : vector<128x32xf32> to vector<128xf32>
    %67 = vector.shape_cast %66 : vector<128xf32> to vector<128x1xf32>
    %68 = vector.extract_strided_slice %62 {offsets = [0, 32], sizes = [1, 1], strides = [1, 1]} : vector<1x33xf32> to vector<1x1xf32>
    %69 = vector.broadcast %68 : vector<1x1xf32> to vector<128x1xf32>
    %70 = arith.addf %67, %69 : vector<128x1xf32>
    %71 = arith.negf %70 : vector<128x1xf32>
    %72 = math.exp %71 : vector<128x1xf32>
    %cst_30 = arith.constant 1.000000e+00 : f32
    %73 = vector.broadcast %cst_30 : f32 to vector<128x1xf32>
    %74 = arith.addf %73, %72 : vector<128x1xf32>
    %75 = arith.divf %73, %74 : vector<128x1xf32>
    %c0_31 = arith.constant 0 : index
    %c0_32 = arith.constant 0 : index
    %76 = vector.load %arg12[%c0_31, %c0_32] : memref<128x8xf32, #tpu.memory_space<vmem>>, vector<128x2xf32>
    tpu.vector_store %arg12[%c0_31, %c0_32], %10 {strides = array<i32>} : memref<128x8xf32, #tpu.memory_space<vmem>>, vector<128x2xf32>,
    %c0_33 = arith.constant 0 : index
    %c2 = arith.constant 2 : index
    %77 = vector.load %arg12[%c0_33, %c2] : memref<128x8xf32, #tpu.memory_space<vmem>>, vector<128x4xf32>
    tpu.vector_store %arg12[%c0_33, %c2], %27 {strides = array<i32>} : memref<128x8xf32, #tpu.memory_space<vmem>>, vector<128x4xf32>,
    %c0_34 = arith.constant 0 : index
    %c6 = arith.constant 6 : index
    %78 = vector.load %arg12[%c0_34, %c6] : memref<128x8xf32, #tpu.memory_space<vmem>>, vector<128x1xf32>
    tpu.vector_store %arg12[%c0_34, %c6], %75 {strides = array<i32>} : memref<128x8xf32, #tpu.memory_space<vmem>>, vector<128x1xf32>,
    %cst_35 = arith.constant 0.000000e+00 : f32
    %79 = vector.broadcast %cst_35 : f32 to vector<128x1xf32>
    %c0_36 = arith.constant 0 : index
    %c7 = arith.constant 7 : index
    %80 = vector.load %arg12[%c0_36, %c7] : memref<128x8xf32, #tpu.memory_space<vmem>>, vector<128x1xf32>
    tpu.vector_store %arg12[%c0_36, %c7], %79 {strides = array<i32>} : memref<128x8xf32, #tpu.memory_space<vmem>>, vector<128x1xf32>,
    return
  }
  func.func @transform_0(%arg0: i32) -> (i32, i32) {
    %c0_i32 = arith.constant 0 : i32
    %c0_i32_0 = arith.constant 0 : i32
    return %arg0, %c0_i32 : i32, i32
  }
  func.func @transform_1(%arg0: i32) -> (i32, i32) {
    %c0_i32 = arith.constant 0 : i32
    %c0_i32_0 = arith.constant 0 : i32
    %c0_i32_1 = arith.constant 0 : i32
    return %c0_i32, %c0_i32_0 : i32, i32
  }
  func.func @transform_2(%arg0: i32) -> (i32, i32) {
    %c0_i32 = arith.constant 0 : i32
    %c0_i32_0 = arith.constant 0 : i32
    %c0_i32_1 = arith.constant 0 : i32
    return %c0_i32, %c0_i32_0 : i32, i32
  }
  func.func @transform_3(%arg0: i32) -> (i32, i32) {
    %c0_i32 = arith.constant 0 : i32
    %c0_i32_0 = arith.constant 0 : i32
    %c0_i32_1 = arith.constant 0 : i32
    return %c0_i32, %c0_i32_0 : i32, i32
  }
  func.func @transform_4(%arg0: i32) -> (i32, i32) {
    %c0_i32 = arith.constant 0 : i32
    %c0_i32_0 = arith.constant 0 : i32
    %c0_i32_1 = arith.constant 0 : i32
    return %c0_i32, %c0_i32_0 : i32, i32
  }
  func.func @transform_5(%arg0: i32) -> (i32, i32) {
    %c0_i32 = arith.constant 0 : i32
    %c0_i32_0 = arith.constant 0 : i32
    %c0_i32_1 = arith.constant 0 : i32
    return %c0_i32, %c0_i32_0 : i32, i32
  }
  func.func @transform_6(%arg0: i32) -> (i32, i32) {
    %c0_i32 = arith.constant 0 : i32
    %c0_i32_0 = arith.constant 0 : i32
    %c0_i32_1 = arith.constant 0 : i32
    return %c0_i32, %c0_i32_0 : i32, i32
  }
  func.func @transform_7(%arg0: i32) -> (i32, i32) {
    %c0_i32 = arith.constant 0 : i32
    %c0_i32_0 = arith.constant 0 : i32
    %c0_i32_1 = arith.constant 0 : i32
    return %c0_i32, %c0_i32_0 : i32, i32
  }
  func.func @transform_8(%arg0: i32) -> (i32, i32) {
    %c0_i32 = arith.constant 0 : i32
    %c0_i32_0 = arith.constant 0 : i32
    %c0_i32_1 = arith.constant 0 : i32
    return %c0_i32, %c0_i32_0 : i32, i32
  }
  func.func @transform_9(%arg0: i32) -> (i32, i32) {
    %c0_i32 = arith.constant 0 : i32
    %c0_i32_0 = arith.constant 0 : i32
    %c0_i32_1 = arith.constant 0 : i32
    return %c0_i32, %c0_i32_0 : i32, i32
  }
  func.func @transform_10(%arg0: i32) -> (i32, i32) {
    %c0_i32 = arith.constant 0 : i32
    %c0_i32_0 = arith.constant 0 : i32
    %c0_i32_1 = arith.constant 0 : i32
    return %c0_i32, %c0_i32_0 : i32, i32
  }
  func.func @transform_11(%arg0: i32) -> (i32, i32) {
    %c0_i32 = arith.constant 0 : i32
    %c0_i32_0 = arith.constant 0 : i32
    return %arg0, %c0_i32 : i32, i32
  }
}

</mosaic_0001>

<bundles_post_ra>
// kernel: transt_iouh_forward.2
= control target key start
LH: loop header
LB: loop body
LE: loop exit
PB: predicated region body
PF: predicated region fallthrough
CT: control target
= control target key end

     0   :  { %vm28_vm0 = vcmask 261120   ;;  %s188_s1 = inlined_call_operand.vmem [shape: f32[32,128], index: 1, kind: input, shape index: {}]   ;;  %s189_s0 = inlined_call_operand.vmem [shape: f32[48,32], index: 0, kind: input, shape index: {}]   ;;  %s190_s2 = inlined_call_operand.vmem [shape: f32[1,128], index: 2, kind: input, shape index: {}]   ;;  %s191_s3 = inlined_call_operand.vmem [shape: f32[48,128], index: 3, kind: output, shape index: {}]  }
   0x1   :  { %v23_v0 = vld [vmem:[%s188_s1 + $0x18] sm:$0xff]  ;;  %v22_v1 = vld [vmem:[%s188_s1 + $0x10] sm:$0xff]  ;;  %v21_v2 = vld [vmem:[%s188_s1 + $0x8] sm:$0xff] }
   0x2   :  { %100 = vmatpush.msra.mxu3 %v23_v0  ;;  %98 = vmatpush.msra.mxu1 %v23_v0  ;;  %v20_v3 = vld [vmem:[%s188_s1] sm:$0xff]  ;;  %v15_v5 = vld [vmem:[%s189_s0 + $0x8] sm:$0xff]  ;;  %v17_v6 = vld [vmem:[%s189_s0 + $0x18] sm:$0xff] }
   0x3   :  { %99 = vmatpush.msra.mxu2 %v23_v0  ;;  %59 = vmatpush.msra.mxu0 %v23_v0  ;;  %v18_v4 = vld [vmem:[%s189_s0 + $0x20] sm:$0xff]  ;;  %v19_v8 = vld [vmem:[%s189_s0 + $0x28] sm:$0xff]  ;;  %v16_v9 = vld [vmem:[%s189_s0 + $0x10] sm:$0xff] }
   0x4   :  { %103 = vmatpush.msra.mxu3 %v22_v1  ;;  %101 = vmatpush.msra.mxu1 %v22_v1  ;;  %v14_v7 = vld [vmem:[%s189_s0] sm:$0xff] }
   0x5   :  { %102 = vmatpush.msra.mxu2 %v22_v1  ;;  %60 = vmatpush.msra.mxu0 %v22_v1  ;;  %v110_v10 = vld [vmem:[%s190_s2] ss:$0 sm:$0xff] }
   0x6   :  { %106 = vmatpush.msra.mxu3 %v21_v2  ;;  %104 = vmatpush.msra.mxu1 %v21_v2 }
   0x7   :  { %105 = vmatpush.msra.mxu2 %v21_v2  ;;  %61 = vmatpush.msra.mxu0 %v21_v2 }
   0x8   :  { %109 = vmatpush.msra.mxu3 %v20_v3  ;;  %107 = vmatpush.msra.mxu1 %v20_v3 }
   0x9   :  { %96 = vmatmul.msk.f32.vlgmr.msra.gmra.mxu3 %vm28_vm0, %v18_v4  ;;  %93 = vmatmul.msk.f32.vlgmr.msra.gmra.mxu1 %vm28_vm0, %v15_v5 }
   0xa   :  { %108 = vmatpush.msra.mxu2 %v20_v3  ;;  %62 = vmatpush.msra.mxu0 %v20_v3 }
   0xb   :  { %95 = vmatmul.msk.f32.vlgmr.msra.gmra.mxu2 %vm28_vm0, %v17_v6  ;;  %92 = vmatmul.msk.f32.vlgmr.msra.gmra.mxu0 %vm28_vm0, %v14_v7 }
  0x11   :  { %97 = vmatmul.msk.f32.gmra.mxu3 %vm28_vm0, %v19_v8  ;;  %94 = vmatmul.msk.f32.gmra.mxu1 %vm28_vm0, %v16_v9 }
  0x86   :  { %v67_v11 = vpop.f32.mrf.mxu1 }
  0x87   :  { %v68_v12 = vadd.f32 %v110_v10, %v67_v11 }
  0x88   :  { %v64_v13 = vpop.f32.mrf.mxu0 }
  0x89   :  { %83 = vst [vmem:[%s191_s3 + $0x8] sm:$0xff] %v68_v12  ;;  %v65_v14 = vadd.f32 %v110_v10, %v64_v13 }
  0x8b   :  { %82 = vst [vmem:[%s191_s3] sm:$0xff] %v65_v14 }
  0x8c   :  { %v76_v15 = vpop.f32.mrf.mxu3 }
  0x8d   :  { %v77_v16 = vadd.f32 %v110_v10, %v76_v15 }
  0x8e   :  { %v70_v17 = vpop.f32.mrf.mxu1  ;;  %v73_v18 = vpop.f32.mrf.mxu2 }
  0x8f   :  { %86 = vst [vmem:[%s191_s3 + $0x20] sm:$0xff] %v77_v16  ;;  %v71_v19 = vadd.f32 %v110_v10, %v70_v17  ;;  %v74_v20 = vadd.f32 %v110_v10, %v73_v18 }
  0x91   :  { %84 = vst [vmem:[%s191_s3 + $0x10] sm:$0xff] %v71_v19 }
  0x92   :  { %85 = vst [vmem:[%s191_s3 + $0x18] sm:$0xff] %v74_v20 }
  0x94   :  { %v79_v21 = vpop.f32.mrf.mxu3 }
  0x95   :  { %v80_v22 = vadd.f32 %v110_v10, %v79_v21 }
  0x97   :  { %87 = vst [vmem:[%s191_s3 + $0x28] sm:$0xff] %v80_v22 }

// kernel: transt_iouh_forward.3
= control target key start
LH: loop header
LB: loop body
LE: loop exit
PB: predicated region body
PF: predicated region fallthrough
CT: control target
= control target key end

     0   :  { %vm62_vm0 = vcmask 261120   ;;  %s2342_s15 = smov 96   ;;  %s2344_s24 = smov 2   ;;  %s3698_s1 = inlined_call_operand.vmem [shape: f32[32,128], index: 1, kind: input, shape index: {}]   ;;  %s3699_s0 = inlined_call_operand.vmem [shape: f32[128,32], index: 0, kind: input, shape index: {}]   ;;  %s3700_s2 = inlined_call_operand.vmem [shape: f32[1,128], index: 2, kind: input, shape index: {}]   ;;  %s3701_s3 = inlined_call_operand.vmem [shape: f32[32,32], index: 3, kind: input, shape index: {}]   ;;  %s3702_s4 = inlined_call_operand.vmem [shape: f32[1,32], index: 4, kind: input, shape index: {}]   ;;  %s3703_s5 = inlined_call_operand.vmem [shape: f32[32,4], index: 5, kind: input, shape index: {}]   ;;  %s3704_s6 = inlined_call_operand.vmem [shape: f32[1,4], index: 6, kind: input, shape index: {}]   ;;  %s3705_s10 = inlined_call_operand.vmem [shape: f32[4,32], index: 10, kind: input, shape index: {}]   ;;  %s3706_s7 = inlined_call_operand.vmem [shape: f32[32,32], index: 7, kind: input, shape index: {}]   ;;  %s3707_s8 = inlined_call_operand.vmem [shape: f32[1,32], index: 8, kind: input, shape index: {}]   ;;  %s3708_s9 = inlined_call_operand.vmem [shape: f32[1,33], index: 9, kind: input, shape index: {}]   ;;  %s3709_s11 = inlined_call_operand.vmem [shape: f32[128,8], index: 11, kind: output, shape index: {}]  }
   0x1   :  { %v57_v0 = vld [vmem:[%s3698_s1 + $0x18] sm:$0xff]  ;;  %v56_v1 = vld [vmem:[%s3698_s1 + $0x10] sm:$0xff]  ;;  %v55_v2 = vld [vmem:[%s3698_s1 + $0x8] sm:$0xff]  ;;  %s2345_s28 = smov 102  }
   0x2   :  { %123 = vmatpush.msra.mxu0 %v57_v0  ;;  %v54_v3 = vld [vmem:[%s3698_s1] sm:$0xff]  ;;  %v39_v5 = vld [vmem:[%s3699_s0 + $0x8] sm:$0xff]  ;;  %v40_v6 = vld [vmem:[%s3699_s0 + $0x10] sm:$0xff] }
   0x3   :  { %v38_v4 = vld [vmem:[%s3699_s0] sm:$0xff]  ;;  %v41_v7 = vld [vmem:[%s3699_s0 + $0x18] sm:$0xff]  ;;  %v43_v9 = vld [vmem:[%s3699_s0 + $0x28] sm:$0xff] }
   0x4   :  { %124 = vmatpush.msra.mxu0 %v56_v1  ;;  %v42_v8 = vld [vmem:[%s3699_s0 + $0x20] sm:$0xff]  ;;  %v44_v10 = vld [vmem:[%s3699_s0 + $0x30] sm:$0xff]  ;;  %v45_v11 = vld [vmem:[%s3699_s0 + $0x38] sm:$0xff] }
   0x5   :  { %v46_v12 = vld [vmem:[%s3699_s0 + $0x40] sm:$0xff]  ;;  %v47_v13 = vld [vmem:[%s3699_s0 + $0x48] sm:$0xff]  ;;  %v48_v14 = vld [vmem:[%s3699_s0 + $0x50] sm:$0xff] }
   0x6   :  { %125 = vmatpush.msra.mxu0 %v55_v2  ;;  %v49_v15 = vld [vmem:[%s3699_s0 + $0x58] sm:$0xff]  ;;  %v194_v17 = vld [vmem:[%s3701_s3 + $0x10] sm:$0xff]  ;;  %v50_v18 = vld [vmem:[%s3699_s0 + $0x60] sm:$0xff] }
   0x7   :  { %v195_v16 = vld [vmem:[%s3701_s3 + $0x18] sm:$0xff]  ;;  %v193_v19 = vld [vmem:[%s3701_s3 + $0x8] sm:$0xff]  ;;  %v192_v20 = vld [vmem:[%s3701_s3] sm:$0xff] }
   0x8   :  { %126 = vmatpush.msra.mxu0 %v54_v3  ;;  %260 = vmatpush.msra.mxu1 %v195_v16  ;;  %v51_v21 = vld [vmem:[%s3699_s0 + $0x68] sm:$0xff]  ;;  %v52_v22 = vld [vmem:[%s3699_s0 + $0x70] sm:$0xff]  ;;  %v53_v23 = vld [vmem:[%s3699_s0 + $0x78] sm:$0xff] }
   0x9   :  { %2044 = vmatmul.msk.f32.vlgmr.msra.gmra.mxu0 %vm62_vm0, %v38_v4  ;;  %v2498_v24 = vld [vmem:[%s3700_s2] ss:$0 sm:$0xff]  ;;  %v332_v61 = vld [vmem:[%s3703_s5 + $0x18] sm:$0xff]  ;;  %v331_v0 = vld [vmem:[%s3703_s5 + $0x10] sm:$0xff] }
   0xa   :  { %261 = vmatpush.msra.mxu1 %v194_v17  ;;  %397 = vmatpush.msra.mxu2 %v332_v61  ;;  %v330_v2 = vld [vmem:[%s3703_s5 + $0x8] sm:$0xff]  ;;  %v329_v3 = vld [vmem:[%s3703_s5] sm:$0xff] }
   0xc   :  { %262 = vmatpush.msra.mxu1 %v193_v19  ;;  %398 = vmatpush.msra.mxu2 %v331_v0 }
   0xe   :  { %263 = vmatpush.msra.mxu1 %v192_v20  ;;  %399 = vmatpush.msra.mxu2 %v330_v2 }
  0x10   :  { %400 = vmatpush.msra.mxu2 %v329_v3 }
  0x11   :  { %2045 = vmatmul.msk.f32.gmra.mxu0 %vm62_vm0, %v39_v5 }
  0x19   :  { %2046 = vmatmul.msk.f32.gmra.mxu0 %vm62_vm0, %v40_v6 }
  0x21   :  { %2047 = vmatmul.msk.f32.gmra.mxu0 %vm62_vm0, %v41_v7 }
  0x29   :  { %2048 = vmatmul.msk.f32.gmra.mxu0 %vm62_vm0, %v42_v8 }
  0x31   :  { %2049 = vmatmul.msk.f32.gmra.mxu0 %vm62_vm0, %v43_v9 }
  0x39   :  { %2050 = vmatmul.msk.f32.gmra.mxu0 %vm62_vm0, %v44_v10 }
  0x41   :  { %2051 = vmatmul.msk.f32.gmra.mxu0 %vm62_vm0, %v45_v11 }
  0x49   :  { %2052 = vmatmul.msk.f32.gmra.mxu0 %vm62_vm0, %v46_v12 }
  0x51   :  { %2053 = vmatmul.msk.f32.gmra.mxu0 %vm62_vm0, %v47_v13  ;;  %v2595_v13 = vld [vmem:[%s3702_s4] ss:$0 sm:$0xff] }
  0x59   :  { %2054 = vmatmul.msk.f32.gmra.mxu0 %vm62_vm0, %v48_v14 }
  0x61   :  { %2055 = vmatmul.msk.f32.gmra.mxu0 %vm62_vm0, %v49_v15 }
  0x69   :  { %2056 = vmatmul.msk.f32.gmra.mxu0 %vm62_vm0, %v50_v18 }
  0x71   :  { %2057 = vmatmul.msk.f32.gmra.mxu0 %vm62_vm0, %v51_v21 }
  0x79   :  { %2058 = vmatmul.msk.f32.gmra.mxu0 %vm62_vm0, %v52_v22 }
  0x81   :  { %2059 = vmatmul.msk.f32.gmra.mxu0 %vm62_vm0, %v53_v23 }
  0x86   :  { %v128_v25 = vpop.f32.mrf.mxu0 }
  0x87   :  { %v2501_v26 = vadd.f32 %v2498_v24, %v128_v25 }
  0x89   :  { %v176_v27 = vmax.f32 %v2501_v26, 0.0 }
  0x8b   :  { %2060 = vmatmul.msk.f32.vlgmr.msra.gmra.mxu1 %vm62_vm0, %v176_v27 }
  0x8e   :  { %v131_v28 = vpop.f32.mrf.mxu0 }
  0x8f   :  { %v2506_v29 = vadd.f32 %v2498_v24, %v131_v28 }
  0x91   :  { %v177_v30 = vmax.f32 %v2506_v29, 0.0 }
  0x93   :  { %2061 = vmatmul.msk.f32.gmra.mxu1 %vm62_vm0, %v177_v30 }
  0x96   :  { %v134_v31 = vpop.f32.mrf.mxu0 }
  0x97   :  { %v2511_v32 = vadd.f32 %v2498_v24, %v134_v31 }
  0x99   :  { %v178_v33 = vmax.f32 %v2511_v32, 0.0 }
  0x9b   :  { %2062 = vmatmul.msk.f32.gmra.mxu1 %vm62_vm0, %v178_v33 }
  0x9e   :  { %v137_v34 = vpop.f32.mrf.mxu0 }
  0x9f   :  { %v2516_v35 = vadd.f32 %v2498_v24, %v137_v34 }
  0xa1   :  { %v179_v36 = vmax.f32 %v2516_v35, 0.0 }
  0xa3   :  { %2063 = vmatmul.msk.f32.gmra.mxu1 %vm62_vm0, %v179_v36 }
  0xa6   :  { %v140_v37 = vpop.f32.mrf.mxu0 }
  0xa7   :  { %v2521_v38 = vadd.f32 %v2498_v24, %v140_v37 }
  0xa9   :  { %v180_v39 = vmax.f32 %v2521_v38, 0.0 }
  0xab   :  { %2064 = vmatmul.msk.f32.gmra.mxu1 %vm62_vm0, %v180_v39 }
  0xae   :  { %v143_v40 = vpop.f32.mrf.mxu0 }
  0xaf   :  { %v2526_v41 = vadd.f32 %v2498_v24, %v143_v40 }
  0xb1   :  { %v181_v42 = vmax.f32 %v2526_v41, 0.0 }
  0xb3   :  { %2065 = vmatmul.msk.f32.gmra.mxu1 %vm62_vm0, %v181_v42 }
  0xb6   :  { %v146_v43 = vpop.f32.mrf.mxu0 }
  0xb7   :  { %v2531_v44 = vadd.f32 %v2498_v24, %v146_v43 }
  0xb9   :  { %v182_v45 = vmax.f32 %v2531_v44, 0.0 }
  0xbb   :  { %2066 = vmatmul.msk.f32.gmra.mxu1 %vm62_vm0, %v182_v45 }
  0xbe   :  { %v149_v46 = vpop.f32.mrf.mxu0 }
  0xbf   :  { %v2536_v47 = vadd.f32 %v2498_v24, %v149_v46 }
  0xc1   :  { %v183_v48 = vmax.f32 %v2536_v47, 0.0 }
  0xc3   :  { %2067 = vmatmul.msk.f32.gmra.mxu1 %vm62_vm0, %v183_v48 }
  0xc6   :  { %v152_v49 = vpop.f32.mrf.mxu0 }
  0xc7   :  { %v2541_v50 = vadd.f32 %v2498_v24, %v152_v49 }
  0xc9   :  { %v184_v51 = vmax.f32 %v2541_v50, 0.0 }
  0xcb   :  { %2068 = vmatmul.msk.f32.gmra.mxu1 %vm62_vm0, %v184_v51 }
  0xce   :  { %v155_v52 = vpop.f32.mrf.mxu0 }
  0xcf   :  { %v2546_v53 = vadd.f32 %v2498_v24, %v155_v52 }
  0xd1   :  { %v185_v54 = vmax.f32 %v2546_v53, 0.0 }
  0xd3   :  { %2069 = vmatmul.msk.f32.gmra.mxu1 %vm62_vm0, %v185_v54 }
  0xd6   :  { %v158_v55 = vpop.f32.mrf.mxu0 }
  0xd7   :  { %v2551_v56 = vadd.f32 %v2498_v24, %v158_v55 }
  0xd9   :  { %v186_v57 = vmax.f32 %v2551_v56, 0.0 }
  0xdb   :  { %2070 = vmatmul.msk.f32.gmra.mxu1 %vm62_vm0, %v186_v57 }
  0xde   :  { %v161_v58 = vpop.f32.mrf.mxu0 }
  0xdf   :  { %v2556_v59 = vadd.f32 %v2498_v24, %v161_v58 }
  0xe1   :  { %v187_v60 = vmax.f32 %v2556_v59, 0.0 }
  0xe3   :  { %2071 = vmatmul.msk.f32.gmra.mxu1 %vm62_vm0, %v187_v60 }
  0xe6   :  { %v164_v62 = vpop.f32.mrf.mxu0 }
  0xe7   :  { %v2564_v63 = vadd.f32 %v2498_v24, %v164_v62 }
  0xe9   :  { %v188_v1 = vmax.f32 %v2564_v63, 0.0 }
  0xeb   :  { %2072 = vmatmul.msk.f32.gmra.mxu1 %vm62_vm0, %v188_v1 }
  0xee   :  { %v167_v4 = vpop.f32.mrf.mxu0 }
  0xef   :  { %v2578_v5 = vadd.f32 %v2498_v24, %v167_v4 }
  0xf1   :  { %v189_v6 = vmax.f32 %v2578_v5, 0.0 }
  0xf3   :  { %2073 = vmatmul.msk.f32.gmra.mxu1 %vm62_vm0, %v189_v6 }
  0xf6   :  { %v170_v7 = vpop.f32.mrf.mxu0 }
  0xf7   :  { %v2583_v8 = vadd.f32 %v2498_v24, %v170_v7 }
  0xf9   :  { %v190_v9 = vmax.f32 %v2583_v8, 0.0 }
  0xfb   :  { %2074 = vmatmul.msk.f32.gmra.mxu1 %vm62_vm0, %v190_v9 }
  0xfe   :  { %v173_v10 = vpop.f32.mrf.mxu0 }
  0xff   :  { %v2588_v11 = vadd.f32 %v2498_v24, %v173_v10 }
 0x101   :  { %v191_v12 = vmax.f32 %v2588_v11, 0.0 }
 0x103   :  { %2075 = vmatmul.msk.f32.gmra.mxu1 %vm62_vm0, %v191_v12 }
 0x108   :  { %v265_v14 = vpop.f32.mrf.mxu1 }
 0x109   :  { %v266_v15 = vadd.f32 %v2595_v13, %v265_v14 }
 0x10b   :  { %v313_v16 = vmax.f32 %v266_v15, 0.0  ;;  %v2632_v15 = vld [vmem:[%s3704_s6] ss:$0 sm:$0xff] }
 0x10d   :  { %2076 = vmatmul.msk.f32.vlgmr.msra.gmra.mxu2 %vm62_vm0, %v313_v16  ;;  %v2337_v16 = vmov 1  }
 0x10e   :  { %2151 = vset.pattern.permute.xlu1 %v2337_v16  ;;  %2155 = vset.pattern.permute.xlu2 %v2337_v16 }
 0x110   :  { %v268_v17 = vpop.f32.mrf.mxu1 }
 0x111   :  { %v269_v18 = vadd.f32 %v2595_v13, %v268_v17  ;;  %v2338_v17 = vmov 0  }
 0x112   :  { %2150 = vset.pattern.permute.xlu0 %v2338_v17 }
 0x113   :  { %v314_v19 = vmax.f32 %v269_v18, 0.0 }
 0x115   :  { %2077 = vmatmul.msk.f32.gmra.mxu2 %vm62_vm0, %v314_v19 }
 0x118   :  { %v271_v20 = vpop.f32.mrf.mxu1 }
 0x119   :  { %v272_v21 = vadd.f32 %v2595_v13, %v271_v20 }
 0x11b   :  { %v315_v22 = vmax.f32 %v272_v21, 0.0 }
 0x11d   :  { %2078 = vmatmul.msk.f32.gmra.mxu2 %vm62_vm0, %v315_v22 }
 0x120   :  { %v274_v23 = vpop.f32.mrf.mxu1 }
 0x121   :  { %v275_v24 = vadd.f32 %v2595_v13, %v274_v23 }
 0x123   :  { %v316_v25 = vmax.f32 %v275_v24, 0.0 }
 0x125   :  { %2079 = vmatmul.msk.f32.gmra.mxu2 %vm62_vm0, %v316_v25 }
 0x128   :  { %v277_v27 = vpop.f32.mrf.mxu1 }
 0x129   :  { %v278_v28 = vadd.f32 %v2595_v13, %v277_v27 }
 0x12b   :  { %v317_v30 = vmax.f32 %v278_v28, 0.0 }
 0x12d   :  { %2080 = vmatmul.msk.f32.gmra.mxu2 %vm62_vm0, %v317_v30 }
 0x130   :  { %v280_v31 = vpop.f32.mrf.mxu1 }
 0x131   :  { %v281_v33 = vadd.f32 %v2595_v13, %v280_v31 }
 0x133   :  { %v318_v34 = vmax.f32 %v281_v33, 0.0 }
 0x135   :  { %2081 = vmatmul.msk.f32.gmra.mxu2 %vm62_vm0, %v318_v34 }
 0x138   :  { %v283_v36 = vpop.f32.mrf.mxu1 }
 0x139   :  { %v284_v37 = vadd.f32 %v2595_v13, %v283_v36 }
 0x13b   :  { %v319_v39 = vmax.f32 %v284_v37, 0.0 }
 0x13d   :  { %2082 = vmatmul.msk.f32.gmra.mxu2 %vm62_vm0, %v319_v39 }
 0x140   :  { %v286_v40 = vpop.f32.mrf.mxu1 }
 0x141   :  { %v287_v42 = vadd.f32 %v2595_v13, %v286_v40 }
 0x143   :  { %v320_v43 = vmax.f32 %v287_v42, 0.0 }
 0x145   :  { %2083 = vmatmul.msk.f32.gmra.mxu2 %vm62_vm0, %v320_v43 }
 0x148   :  { %v289_v45 = vpop.f32.mrf.mxu1 }
 0x149   :  { %v290_v46 = vadd.f32 %v2595_v13, %v289_v45 }
 0x14b   :  { %v321_v48 = vmax.f32 %v290_v46, 0.0 }
 0x14d   :  { %2084 = vmatmul.msk.f32.gmra.mxu2 %vm62_vm0, %v321_v48 }
 0x150   :  { %v292_v49 = vpop.f32.mrf.mxu1 }
 0x151   :  { %v293_v51 = vadd.f32 %v2595_v13, %v292_v49 }
 0x153   :  { %v322_v52 = vmax.f32 %v293_v51, 0.0 }
 0x155   :  { %2085 = vmatmul.msk.f32.gmra.mxu2 %vm62_vm0, %v322_v52 }
 0x158   :  { %v295_v54 = vpop.f32.mrf.mxu1 }
 0x159   :  { %v296_v55 = vadd.f32 %v2595_v13, %v295_v54 }
 0x15b   :  { %v323_v57 = vmax.f32 %v296_v55, 0.0 }
 0x15d   :  { %2086 = vmatmul.msk.f32.gmra.mxu2 %vm62_vm0, %v323_v57 }
 0x160   :  { %v298_v58 = vpop.f32.mrf.mxu1 }
 0x161   :  { %v299_v60 = vadd.f32 %v2595_v13, %v298_v58 }
 0x163   :  { %v324_v61 = vmax.f32 %v299_v60, 0.0 }
 0x165   :  { %2087 = vmatmul.msk.f32.gmra.mxu2 %vm62_vm0, %v324_v61 }
 0x168   :  { %v301_v62 = vpop.f32.mrf.mxu1 }
 0x169   :  { %v302_v0 = vadd.f32 %v2595_v13, %v301_v62 }
 0x16b   :  { %v325_v1 = vmax.f32 %v302_v0, 0.0 }
 0x16d   :  { %2088 = vmatmul.msk.f32.gmra.mxu2 %vm62_vm0, %v325_v1 }
 0x170   :  { %v304_v2 = vpop.f32.mrf.mxu1 }
 0x171   :  { %v305_v3 = vadd.f32 %v2595_v13, %v304_v2 }
 0x173   :  { %v326_v4 = vmax.f32 %v305_v3, 0.0 }
 0x175   :  { %2089 = vmatmul.msk.f32.gmra.mxu2 %vm62_vm0, %v326_v4 }
 0x178   :  { %v307_v6 = vpop.f32.mrf.mxu1 }
 0x179   :  { %v308_v7 = vadd.f32 %v2595_v13, %v307_v6 }
 0x17b   :  { %v327_v9 = vmax.f32 %v308_v7, 0.0 }
 0x17d   :  { %2090 = vmatmul.msk.f32.gmra.mxu2 %vm62_vm0, %v327_v9 }
 0x180   :  { %v310_v10 = vpop.f32.mrf.mxu1 }
 0x181   :  { %v311_v12 = vadd.f32 %v2595_v13, %v310_v10 }
 0x183   :  { %v328_v14 = vmax.f32 %v311_v12, 0.0 }
 0x185   :  { %2091 = vmatmul.msk.f32.gmra.mxu2 %vm62_vm0, %v328_v14 }
 0x190   :  { %v402_v18 = vpop.f32.mrf.mxu2 }
 0x191   :  { %v403_v19 = vadd.f32 %v2632_v15, %v402_v18  ;;  %v2339_v18 = vmov 3  }
 0x193   :  { %v2092_v13 = vmul.f32 -1.442695, %v403_v19 }
 0x195   :  { %2209 = vpow2.f32 %v2092_v13  ;;  %v3710_v13 = vmov 2  }
 0x198   :  { %v405_v20 = vpop.f32.mrf.mxu2 }
 0x199   :  { %v406_v21 = vadd.f32 %v2632_v15, %v405_v20 }
 0x19b   :  { %v2210_v22 = vpop.eup %2209  ;;  %v2093_v23 = vmul.f32 -1.442695, %v406_v21 }
 0x19c   :  { %v498_v24 = vadd.f32 1.0, %v2210_v22 }
 0x19d   :  { %2211 = vpow2.f32 %v2093_v23 }
 0x19e   :  { %2213 = vrcp.f32 %v498_v24  ;;  %v525_v39 = vand.u32 2147483648, %v498_v24  ;;  %v523_v43 = vand.u32 2147483647, %v498_v24  ;;  %vm519_vm2 = vweird.f32 %v498_v24 }
 0x1a0   :  { %v408_v25 = vpop.f32.mrf.mxu2  ;;  %v526_v52 = vor.u32 1.1754944e-38, %v525_v39  ;;  %vm524_vm4 = vcmp.eq.f32.partialorder %v523_v43, 8.507059e+37 }
 0x1a1   :  { %v409_v27 = vadd.f32 %v2632_v15, %v408_v25 }
 0x1a3   :  { %v2212_v28 = vpop.eup %2211  ;;  %v2094_v30 = vmul.f32 -1.442695, %v409_v27 }
 0x1a4   :  { %v2214_v31 = vpop.eup %2213  ;;  %v499_v33 = vadd.f32 1.0, %v2212_v28 }
 0x1a5   :  { %v515_v34 = vmul.f32 %v2214_v31, %v498_v24  ;;  %2215 = vpow2.f32 %v2094_v30  ;;  %vm520_vm1 = vweird.f32 %v2214_v31 }
 0x1a6   :  { %2217 = vrcp.f32 %v499_v33  ;;  %vm521_vm3 = vmor %vm519_vm2, %vm520_vm1  ;;  %v540_v61 = vand.u32 2147483648, %v499_v33  ;;  %v538_v1 = vand.u32 2147483647, %v499_v33  ;;  %vm534_vm6 = vweird.f32 %v499_v33 }
 0x1a7   :  { %v516_v36 = vsub.f32 1.0, %v515_v34 }
 0x1a8   :  { %v411_v37 = vpop.f32.mrf.mxu2  ;;  %v541_v9 = vor.u32 1.1754944e-38, %v540_v61  ;;  %vm539_vm8 = vcmp.eq.f32.partialorder %v538_v1, 8.507059e+37 }
 0x1a9   :  { %v412_v40 = vadd.f32 %v2632_v15, %v411_v37  ;;  %v517_v42 = vmul.f32 %v2214_v31, %v516_v36 }
 0x1ab   :  { %v2216_v45 = vpop.eup %2215  ;;  %v2095_v46 = vmul.f32 -1.442695, %v412_v40  ;;  %v518_v48 = vadd.f32 %v2214_v31, %v517_v42 }
 0x1ac   :  { %v2218_v49 = vpop.eup %2217  ;;  %v2641_v51 = vadd.f32 1.0, %v2216_v45 }
 0x1ad   :  { %v530_v54 = vmul.f32 %v2218_v49, %v499_v33  ;;  %2219 = vpow2.f32 %v2095_v46  ;;  %v522_v55 = vsel %vm521_vm3, %v2214_v31, %v518_v48  ;;  %vm535_vm5 = vweird.f32 %v2218_v49 }
 0x1ae   :  { %2221 = vrcp.f32 %v2641_v51  ;;  %v2644_v57 = vsel %vm524_vm4, %v526_v52, %v522_v55  ;;  %vm536_vm7 = vmor %vm534_vm6, %vm535_vm5  ;;  %v555_v36 = vand.u32 2147483648, %v2641_v51  ;;  %vm549_vm10 = vweird.f32 %v2641_v51 }
 0x1af   :  { %v531_v58 = vsub.f32 1.0, %v530_v54  ;;  %853 = vperm.xlu1 %2151, %v2644_v57   ;;  %757 = vperm.xlu0 %2150, %v2644_v57   ;;  %v553_v37 = vand.u32 2147483647, %v2641_v51 }
 0x1b0   :  { %v414_v60 = vpop.f32.mrf.mxu2  ;;  %v556_v46 = vor.u32 1.1754944e-38, %v555_v36 }
 0x1b1   :  { %v415_v62 = vadd.f32 %v2632_v15, %v414_v60  ;;  %v532_v0 = vmul.f32 %v2218_v49, %v531_v58  ;;  %vm554_vm12 = vcmp.eq.f32.partialorder %v553_v37, 8.507059e+37 }
 0x1b3   :  { %v2220_v2 = vpop.eup %2219  ;;  %v2096_v3 = vmul.f32 -1.442695, %v415_v62  ;;  %v533_v4 = vadd.f32 %v2218_v49, %v532_v0 }
 0x1b4   :  { %v2222_v6 = vpop.eup %2221  ;;  %v2649_v7 = vadd.f32 1.0, %v2220_v2 }
 0x1b5   :  { %v545_v10 = vmul.f32 %v2222_v6, %v2641_v51  ;;  %2223 = vpow2.f32 %v2096_v3  ;;  %v537_v12 = vsel %vm536_vm7, %v2218_v49, %v533_v4  ;;  %vm550_vm9 = vweird.f32 %v2222_v6 }
 0x1b6   :  { %2225 = vrcp.f32 %v2649_v7  ;;  %v2653_v14 = vsel %vm539_vm8, %v541_v9, %v537_v12  ;;  %vm551_vm11 = vmor %vm549_vm10, %vm550_vm9  ;;  %v570_v60 = vand.u32 2147483648, %v2649_v7  ;;  %vm564_vm14 = vweird.f32 %v2649_v7 }
 0x1b7   :  { %857 = vperm.xlu2 %2155, %v2653_v14   ;;  %2153 = vset.pattern.permute.xlu1 %v2339_v18  ;;  %v546_v19 = vsub.f32 1.0, %v545_v10  ;;  %v568_v0 = vand.u32 2147483647, %v2649_v7 }
 0x1b8   :  { %2152 = vset.pattern.permute.xlu0 %v3710_v13  ;;  %v417_v20 = vpop.f32.mrf.mxu2  ;;  %1047 = vperm.xlu1 %2153, %v2644_v57  }
 0x1b9   :  { %v418_v21 = vadd.f32 %v2632_v15, %v417_v20  ;;  %950 = vperm.xlu0 %2152, %v2644_v57   ;;  %v547_v27 = vmul.f32 %v2222_v6, %v546_v19  ;;  %vm569_vm1 = vcmp.eq.f32.partialorder %v568_v0, 8.507059e+37 }
 0x1bb   :  { %v2224_v22 = vpop.eup %2223  ;;  %v2097_v23 = vmul.f32 -1.442695, %v418_v21  ;;  %v548_v31 = vadd.f32 %v2222_v6, %v547_v27 }
 0x1bc   :  { %v2226_v24 = vpop.eup %2225  ;;  %v2661_v25 = vadd.f32 1.0, %v2224_v22 }
 0x1bd   :  { %v560_v28 = vmul.f32 %v2226_v24, %v2649_v7  ;;  %2227 = vpow2.f32 %v2097_v23  ;;  %v552_v45 = vsel %vm551_vm11, %v2222_v6, %v548_v31  ;;  %vm565_vm13 = vweird.f32 %v2226_v24 }
 0x1be   :  { %2229 = vrcp.f32 %v2661_v25  ;;  %v2681_v52 = vsel %vm554_vm12, %v556_v46, %v552_v45  ;;  %vm566_vm15 = vmor %vm564_vm14, %vm565_vm13  ;;  %v571_v6 = vor.u32 1.1754944e-38, %v570_v60  ;;  %v585_v22 = vand.u32 2147483648, %v2661_v25 }
 0x1bf   :  { %2156 = vset.pattern.permute.xlu2 %v3710_v13  ;;  %v561_v33 = vsub.f32 1.0, %v560_v28  ;;  %vm579_vm3 = vweird.f32 %v2661_v25  ;;  %v583_v27 = vand.u32 2147483647, %v2661_v25 }
 0x1c0   :  { %v420_v30 = vpop.f32.mrf.mxu2  ;;  %954 = vperm.xlu2 %2156, %v2653_v14   ;;  %1051 = vperm.xlu1 %2153, %v2653_v14   ;;  %v586_v37 = vor.u32 1.1754944e-38, %v585_v22 }
 0x1c1   :  { %v421_v34 = vadd.f32 %v2632_v15, %v420_v30  ;;  %2154 = vset.pattern.permute.xlu0 %v2338_v17  ;;  %v562_v48 = vmul.f32 %v2226_v24, %v561_v33  ;;  %vm584_vm7 = vcmp.eq.f32.partialorder %v583_v27, 8.507059e+37 }
 0x1c2   :  { %762 = vperm.xlu0 %2154, %v2653_v14  }
 0x1c3   :  { %v2228_v39 = vpop.eup %2227  ;;  %v2098_v40 = vmul.f32 -1.442695, %v421_v34  ;;  %v563_v55 = vadd.f32 %v2226_v24, %v562_v48 }
 0x1c4   :  { %v2674_v42 = vpop.eup %2229  ;;  %v2676_v43 = vadd.f32 1.0, %v2228_v39 }
 0x1c5   :  { %2231 = vpow2.f32 %v2098_v40  ;;  %v575_v49 = vmul.f32 %v2674_v42, %v2661_v25  ;;  %v567_v4 = vsel %vm566_vm15, %v2226_v24, %v563_v55  ;;  %vm580_vm2 = vweird.f32 %v2674_v42 }
 0x1c6   :  { %2233 = vrcp.f32 %v2676_v43  ;;  %v2700_v7 = vsel %vm569_vm1, %v571_v6, %v567_v4  ;;  %vm2714_vm4 = vmor %vm579_vm3, %vm580_vm2  ;;  %v600_v34 = vand.u32 2147483648, %v2676_v43  ;;  %vm594_vm6 = vweird.f32 %v2676_v43 }
 0x1c7   :  { %v576_v58 = vsub.f32 1.0, %v575_v49  ;;  %v598_v25 = vand.u32 2147483647, %v2676_v43 }
 0x1c8   :  { %v423_v51 = vpop.f32.mrf.mxu2  ;;  %958 = vperm.xlu2 %2156, %v2681_v52   ;;  %2157 = vset.pattern.permute.xlu1 %v2338_v17  ;;  %v601_v46 = vor.u32 1.1754944e-38, %v600_v34 }
 0x1c9   :  { %v424_v54 = vadd.f32 %v2632_v15, %v423_v51  ;;  %767 = vperm.xlu1 %2157, %v2681_v52   ;;  %v577_v9 = vmul.f32 %v2674_v42, %v576_v58  ;;  %vm599_vm9 = vcmp.eq.f32.partialorder %v598_v25, 8.507059e+37 }
 0x1ca   :  { %2158 = vset.pattern.permute.xlu0 %v2337_v16 }
 0x1cb   :  { %v2232_v61 = vpop.eup %2231  ;;  %v2099_v62 = vmul.f32 -1.442695, %v424_v54  ;;  %861 = vperm.xlu0 %2158, %v2681_v52   ;;  %v578_v20 = vadd.f32 %v2674_v42, %v577_v9 }
 0x1cc   :  { %v2234_v1 = vpop.eup %2233  ;;  %v2692_v2 = vadd.f32 1.0, %v2232_v61 }
 0x1cd   :  { %v590_v3 = vmul.f32 %v2234_v1, %v2676_v43  ;;  %2235 = vpow2.f32 %v2099_v62  ;;  %vm595_vm5 = vweird.f32 %v2234_v1  ;;  %v582_v33 = vsel %vm2714_vm4, %v2674_v42, %v578_v20 }
 0x1ce   :  { %2237 = vrcp.f32 %v2692_v2  ;;  %vm596_vm8 = vmor %vm594_vm6, %vm595_vm5  ;;  %v2728_v45 = vsel %vm584_vm7, %v586_v37, %v582_v33  ;;  %v615_v60 = vand.u32 2147483648, %v2692_v2  ;;  %vm609_vm11 = vweird.f32 %v2692_v2 }
 0x1cf   :  { %v591_v10 = vsub.f32 1.0, %v590_v3  ;;  %v613_v62 = vand.u32 2147483647, %v2692_v2 }
 0x1d0   :  { %v2697_v12 = vpop.f32.mrf.mxu2  ;;  %2162 = vset.pattern.permute.xlu2 %v2339_v18 }
 0x1d1   :  { %1059 = vperm.xlu2 %2162, %v2700_v7   ;;  %772 = vperm.xlu1 %2157, %v2700_v7   ;;  %v592_v19 = vmul.f32 %v2234_v1, %v591_v10  ;;  %vm614_vm13 = vcmp.eq.f32.partialorder %v613_v62, 8.507059e+37 }
 0x1d3   :  { %v2236_v21 = vpop.eup %2235  ;;  %2159 = vset.pattern.permute.xlu0 %v2339_v18  ;;  %v593_v31 = vadd.f32 %v2234_v1, %v592_v19  ;;  %v427_v19 = vadd.f32 %v2632_v15, %v2697_v12 }
 0x1d4   :  { %v2238_v23 = vpop.eup %2237  ;;  %v2708_v24 = vadd.f32 1.0, %v2236_v21  ;;  %1055 = vperm.xlu0 %2159, %v2681_v52  }
 0x1d5   :  { %v605_v28 = vmul.f32 %v2238_v23, %v2692_v2  ;;  %v597_v42 = vsel %vm596_vm8, %v2234_v1, %v593_v31  ;;  %vm610_vm10 = vweird.f32 %v2238_v23  ;;  %v616_v2 = vor.u32 1.1754944e-38, %v615_v60 }
 0x1d6   :  { %2239 = vrcp.f32 %v2708_v24  ;;  %v2733_v51 = vsel %vm599_vm9, %v601_v46, %v597_v42  ;;  %vm2741_vm12 = vmor %vm609_vm11, %vm610_vm10  ;;  %v2100_v27 = vmul.f32 -1.442695, %v427_v19  ;;  %vm624_vm15 = vweird.f32 %v2708_v24 }
 0x1d7   :  { %v606_v36 = vsub.f32 1.0, %v605_v28  ;;  %v628_v28 = vand.u32 2147483647, %v2708_v24 }
 0x1d8   :  { %v429_v39 = vpop.f32.mrf.mxu2 }
 0x1d9   :  { %v430_v40 = vadd.f32 %v2632_v15, %v429_v39  ;;  %2163 = vset.pattern.permute.xlu2 %v2338_v17  ;;  %2160 = vset.pattern.permute.xlu1 %v2337_v16  ;;  %v607_v48 = vmul.f32 %v2238_v23, %v606_v36  ;;  %vm629_vm2 = vcmp.eq.f32.partialorder %v628_v28, 8.507059e+37 }
 0x1da   :  { %777 = vperm.xlu2 %2163, %v2728_v45   ;;  %865 = vperm.xlu1 %2160, %v2700_v7  }
 0x1db   :  { %v2101_v49 = vmul.f32 -1.442695, %v430_v40  ;;  %v608_v55 = vadd.f32 %v2238_v23, %v607_v48 }
 0x1dc   :  { %v2240_v43 = vpop.eup %2239  ;;  %2168 = vset.pattern.permute.xlu0 %v3710_v13 }
 0x1dd   :  { %v620_v54 = vmul.f32 %v2240_v43, %v2708_v24  ;;  %2241 = vpow2.f32 %v2101_v49  ;;  %970 = vperm.xlu0 %2168, %v2733_v51   ;;  %v612_v3 = vsel %vm2741_vm12, %v2238_v23, %v608_v55  ;;  %vm625_vm14 = vweird.f32 %v2240_v43 }
 0x1de   :  { %v2754_v20 = vsel %vm614_vm13, %v616_v2, %v612_v3  ;;  %v630_v23 = vand.u32 2147483648, %v2708_v24  ;;  %vm626_vm1 = vmor %vm624_vm15, %vm625_vm14 }
 0x1df   :  { %v621_v58 = vsub.f32 1.0, %v620_v54 }
 0x1e0   :  { %v432_v61 = vpop.f32.mrf.mxu2  ;;  %v631_v34 = vor.u32 1.1754944e-38, %v630_v23 }
 0x1e1   :  { %v433_v0 = vadd.f32 %v2632_v15, %v432_v61  ;;  %v622_v9 = vmul.f32 %v2240_v43, %v621_v58 }
 0x1e2   :  { %2164 = vset.pattern.permute.xlu2 %v2337_v16  ;;  %2161 = vset.pattern.permute.xlu1 %v3710_v13 }
 0x1e3   :  { %v2242_v4 = vpop.eup %2241  ;;  %v2102_v6 = vmul.f32 -1.442695, %v433_v0  ;;  %869 = vperm.xlu2 %2164, %v2728_v45   ;;  %962 = vperm.xlu1 %2161, %v2700_v7   ;;  %v623_v21 = vadd.f32 %v2240_v43, %v622_v9 }
 0x1e4   :  { %v507_v10 = vadd.f32 1.0, %v2242_v4 }
 0x1e5   :  { %2243 = vpow2.f32 %v2102_v6  ;;  %2170 = vset.pattern.permute.xlu0 %v2338_v17  ;;  %v627_v30 = vsel %vm626_vm1, %v2240_v43, %v623_v21 }
 0x1e6   :  { %2245 = vrcp.f32 %v507_v10  ;;  %787 = vperm.xlu0 %2170, %v2754_v20   ;;  %v2764_v37 = vsel %vm629_vm2, %v631_v34, %v627_v30  ;;  %v660_v39 = vand.u32 2147483648, %v507_v10  ;;  %v658_v46 = vand.u32 2147483647, %v507_v10 }
 0x1e7   :  { %2247 = vpow2.f32 %v2100_v27  ;;  %vm654_vm4 = vweird.f32 %v507_v10 }
 0x1e8   :  { %v435_v22 = vpop.f32.mrf.mxu2  ;;  %v661_v55 = vor.u32 1.1754944e-38, %v660_v39  ;;  %vm659_vm6 = vcmp.eq.f32.partialorder %v658_v46, 8.507059e+37 }
 0x1e9   :  { %v436_v1 = vadd.f32 %v2632_v15, %v435_v22 }
 0x1eb   :  { %v2244_v12 = vpop.eup %2243  ;;  %2165 = vset.pattern.permute.xlu2 %v2339_v18  ;;  %966 = vperm.xlu1 %2161, %v2728_v45   ;;  %v2103_v19 = vmul.f32 -1.442695, %v436_v1 }
 0x1ec   :  { %v2246_v31 = vpop.eup %2245  ;;  %v508_v33 = vadd.f32 1.0, %v2244_v12  ;;  %1063 = vperm.xlu2 %2165, %v2728_v45  }
 0x1ed   :  { %v650_v36 = vmul.f32 %v2246_v31, %v507_v10  ;;  %vm655_vm3 = vweird.f32 %v2246_v31  ;;  %v2248_v48 = vpop.eup %2247 }
 0x1ee   :  { %2249 = vrcp.f32 %v508_v33  ;;  %2175 = vset.pattern.permute.xlu0 %v2337_v16  ;;  %vm656_vm5 = vmor %vm654_vm4, %vm655_vm3  ;;  %v2772_v61 = vadd.f32 1.0, %v2248_v48  ;;  %v675_v4 = vand.u32 2147483648, %v508_v33  ;;  %v673_v9 = vand.u32 2147483647, %v508_v33 }
 0x1ef   :  { %v651_v24 = vsub.f32 1.0, %v650_v36  ;;  %881 = vperm.xlu0 %2175, %v2764_v37   ;;  %vm669_vm8 = vweird.f32 %v508_v33 }
 0x1f0   :  { %v438_v25 = vpop.f32.mrf.mxu2  ;;  %v676_v22 = vor.u32 1.1754944e-38, %v675_v4  ;;  %vm674_vm10 = vcmp.eq.f32.partialorder %v673_v9, 8.507059e+37  ;;  %vm639_vm2 = vweird.f32 %v2772_v61 }
 0x1f1   :  { %v439_v40 = vadd.f32 %v2632_v15, %v438_v25  ;;  %v652_v42 = vmul.f32 %v2246_v31, %v651_v24 }
 0x1f3   :  { %v2104_v49 = vmul.f32 -1.442695, %v439_v40  ;;  %2167 = vset.pattern.permute.xlu1 %v2337_v16  ;;  %v653_v43 = vadd.f32 %v2246_v31, %v652_v42 }
 0x1f4   :  { %v2250_v54 = vpop.eup %2249  ;;  %2166 = vset.pattern.permute.xlu2 %v2338_v17  ;;  %873 = vperm.xlu1 %2167, %v2733_v51  }
 0x1f5   :  { %v665_v58 = vmul.f32 %v2250_v54, %v508_v33  ;;  %2251 = vpow2.f32 %v2104_v49  ;;  %782 = vperm.xlu2 %2166, %v2733_v51   ;;  %v657_v60 = vsel %vm656_vm5, %v2246_v31, %v653_v43  ;;  %vm670_vm7 = vweird.f32 %v2250_v54 }
 0x1f6   :  { %v2774_v62 = vsel %vm659_vm6, %v661_v55, %v657_v60  ;;  %2253 = vrcp.f32 %v2772_v61  ;;  %vm671_vm9 = vmor %vm669_vm8, %vm670_vm7 }
 0x1f7   :  { %v666_v0 = vsub.f32 1.0, %v665_v58  ;;  %2180 = vset.pattern.permute.xlu0 %v2338_v17 }
 0x1f8   :  { %802 = vperm.xlu0 %2180, %v2774_v62   ;;  %v441_v3 = vpop.f32.mrf.mxu2 }
 0x1f9   :  { %v442_v6 = vadd.f32 %v2632_v15, %v441_v3  ;;  %v667_v2 = vmul.f32 %v2250_v54, %v666_v0 }
 0x1fb   :  { %v2252_v10 = vpop.eup %2251  ;;  %v2105_v21 = vmul.f32 -1.442695, %v442_v6  ;;  %v668_v23 = vadd.f32 %v2250_v54, %v667_v2 }
 0x1fc   :  { %v510_v27 = vadd.f32 1.0, %v2252_v10  ;;  %2169 = vset.pattern.permute.xlu1 %v2339_v18  ;;  %v2787_v30 = vpop.eup %2253 }
 0x1fd   :  { %2255 = vpow2.f32 %v2105_v21  ;;  %2171 = vset.pattern.permute.xlu2 %v2337_v16  ;;  %1067 = vperm.xlu1 %2169, %v2733_v51   ;;  %v672_v28 = vsel %vm671_vm9, %v2250_v54, %v668_v23  ;;  %v635_v36 = vmul.f32 %v2787_v30, %v2772_v61  ;;  %vm640_vm15 = vweird.f32 %v2787_v30 }
 0x1fe   :  { %2257 = vrcp.f32 %v510_v27  ;;  %877 = vperm.xlu2 %2171, %v2754_v20   ;;  %v2785_v12 = vsel %vm674_vm10, %v676_v22, %v672_v28  ;;  %v705_v49 = vand.u32 2147483648, %v510_v27  ;;  %v703_v55 = vand.u32 2147483647, %v510_v27  ;;  %vm2819_vm3 = vmor %vm639_vm2, %vm640_vm15 }
 0x1ff   :  { %2259 = vpow2.f32 %v2103_v19  ;;  %v636_v42 = vsub.f32 1.0, %v635_v36  ;;  %vm699_vm12 = vweird.f32 %v510_v27 }
 0x200   :  { %2183 = vset.pattern.permute.xlu0 %v2337_v16  ;;  %v444_v31 = vpop.f32.mrf.mxu2  ;;  %v706_v3 = vor.u32 1.1754944e-38, %v705_v49  ;;  %vm704_vm14 = vcmp.eq.f32.partialorder %v703_v55, 8.507059e+37 }
 0x201   :  { %893 = vperm.xlu0 %2183, %v2785_v12   ;;  %v445_v58 = vadd.f32 %v2632_v15, %v444_v31  ;;  %v637_v4 = vmul.f32 %v2787_v30, %v636_v42 }
 0x203   :  { %v2256_v33 = vpop.eup %2255  ;;  %v2106_v9 = vmul.f32 -1.442695, %v445_v58  ;;  %v638_v19 = vadd.f32 %v2787_v30, %v637_v4 }
 0x204   :  { %v2258_v34 = vpop.eup %2257  ;;  %v511_v24 = vadd.f32 1.0, %v2256_v33  ;;  %v643_v33 = vand.u32 2147483647, %v2772_v61 }
 0x205   :  { %v2260_v25 = vpop.eup %2259  ;;  %v695_v39 = vmul.f32 %v2258_v34, %v510_v27  ;;  %2172 = vset.pattern.permute.xlu1 %v3710_v13  ;;  %vm700_vm11 = vweird.f32 %v2258_v34  ;;  %v645_v27 = vand.u32 2147483648, %v2772_v61 }
 0x206   :  { %2261 = vrcp.f32 %v511_v24  ;;  %2173 = vset.pattern.permute.xlu2 %v2339_v18  ;;  %974 = vperm.xlu1 %2172, %v2754_v20   ;;  %v2797_v46 = vadd.f32 1.0, %v2260_v25  ;;  %vm701_vm13 = vmor %vm699_vm12, %vm700_vm11  ;;  %v720_v21 = vand.u32 2147483648, %v511_v24  ;;  %v718_v28 = vand.u32 2147483647, %v511_v24 }
 0x207   :  { %v696_v40 = vsub.f32 1.0, %v695_v39  ;;  %1071 = vperm.xlu2 %2173, %v2754_v20   ;;  %vm714_vm4 = vweird.f32 %v511_v24  ;;  %vm644_vm7 = vcmp.eq.f32.partialorder %v643_v33, 8.507059e+37 }
 0x208   :  { %v447_v48 = vpop.f32.mrf.mxu2  ;;  %2263 = vrcp.f32 %v2797_v46  ;;  %v721_v42 = vor.u32 1.1754944e-38, %v720_v21  ;;  %vm719_vm6 = vcmp.eq.f32.partialorder %v718_v28, 8.507059e+37  ;;  %vm684_vm12 = vweird.f32 %v2797_v46 }
 0x209   :  { %v448_v43 = vadd.f32 %v2632_v15, %v447_v48  ;;  %2186 = vset.pattern.permute.xlu0 %v2338_v17  ;;  %v697_v54 = vmul.f32 %v2258_v34, %v696_v40  ;;  %v642_v40 = vsel %vm2819_vm3, %v2787_v30, %v638_v19  ;;  %v646_v48 = vor.u32 1.1754944e-38, %v645_v27 }
 0x20a   :  { %v688_v33 = vand.u32 2147483647, %v2797_v46 }
 0x20b   :  { %v2107_v60 = vmul.f32 -1.442695, %v448_v43  ;;  %v698_v0 = vadd.f32 %v2258_v34, %v697_v54 }
 0x20c   :  { %v2262_v1 = vpop.eup %2261  ;;  %vm689_vm15 = vcmp.eq.f32.partialorder %v688_v33, 8.507059e+37 }
 0x20d   :  { %v710_v6 = vmul.f32 %v2262_v1, %v511_v24  ;;  %2265 = vpow2.f32 %v2107_v60  ;;  %v702_v2 = vsel %vm701_vm13, %v2258_v34, %v698_v0  ;;  %vm715_vm1 = vweird.f32 %v2262_v1 }
 0x20e   :  { %2174 = vset.pattern.permute.xlu1 %v2338_v17  ;;  %v2805_v10 = vsel %vm704_vm14, %v706_v3, %v702_v2  ;;  %v2815_v31 = vpop.eup %2263  ;;  %2267 = vpow2.f32 %v2106_v9  ;;  %vm716_vm5 = vmor %vm714_vm4, %vm715_vm1  ;;  %v2832_v24 = vsel %vm644_vm7, %v646_v48, %v642_v40 }
 0x20f   :  { %v711_v15 = vsub.f32 1.0, %v710_v6  ;;  %1075 = vperm.xlu2 %2173, %v2764_v37   ;;  %792 = vperm.xlu1 %2174, %v2764_v37   ;;  %v680_v61 = vmul.f32 %v2815_v31, %v2797_v46  ;;  %vm685_vm9 = vweird.f32 %v2815_v31 }
 0x210   :  { %817 = vperm.xlu0 %2186, %v2805_v10   ;;  %vm686_vm14 = vmor %vm684_vm12, %vm685_vm9 }
 0x211   :  { %v2812_v23 = vpop.permute.xlu2 %857  ;;  %v712_v22 = vmul.f32 %v2262_v1, %v711_v15  ;;  %v681_v30 = vsub.f32 1.0, %v680_v61 }
 0x213   :  { %v2266_v34 = vpop.eup %2265  ;;  %v713_v25 = vadd.f32 %v2262_v1, %v712_v22  ;;  %v690_v22 = vand.u32 2147483648, %v2797_v46 }
 0x214   :  { %v513_v39 = vadd.f32 1.0, %v2266_v34  ;;  %v2268_v54 = vpop.eup %2267 }
 0x215   :  { %v717_v49 = vsel %vm716_vm5, %v2262_v1, %v713_v25  ;;  %v2840_v58 = vadd.f32 1.0, %v2268_v54  ;;  %v682_v1 = vmul.f32 %v2815_v31, %v681_v30  ;;  %v754_v54 = vld [vmem:[%s3705_s10] sm:$0xf]  ;;  %s2341_s10 = smov 32   ;;  %vm1860_vm5 = vcmask 15360  }
 0x216   :  { %2269 = vrcp.f32 %v513_v39  ;;  %v2828_v43 = vsel %vm719_vm6, %v721_v42, %v717_v49  ;;  %v750_v4 = vand.u32 2147483648, %v513_v39  ;;  %v748_v15 = vand.u32 2147483647, %v513_v39 }
 0x217   :  { %2177 = vset.pattern.permute.xlu2 %v2338_v17  ;;  %2176 = vset.pattern.permute.xlu1 %v3710_v13  ;;  %2271 = vrcp.f32 %v2840_v58  ;;  %v683_v21 = vadd.f32 %v2815_v31, %v682_v1  ;;  %vm744_vm10 = vweird.f32 %v513_v39  ;;  %v691_v42 = vor.u32 1.1754944e-38, %v690_v22 }
 0x218   :  { %2189 = vset.pattern.permute.xlu0 %v2337_v16  ;;  %797 = vperm.xlu2 %2177, %v2832_v24   ;;  %v751_v28 = vor.u32 1.1754944e-38, %v750_v4  ;;  %vm749_vm13 = vcmp.eq.f32.partialorder %v748_v15, 8.507059e+37  ;;  %v2883_v1 = vperm.slane %v754_v54, 2  ;;  %v735_v22 = vand.u32 2147483648, %v2840_v58 }
 0x219   :  { %978 = vperm.xlu1 %2176, %v2764_v37   ;;  %905 = vperm.xlu0 %2189, %v2828_v43   ;;  %v687_v40 = vsel %vm686_vm14, %v2815_v31, %v683_v21  ;;  %vm729_vm2 = vweird.f32 %v2840_v58  ;;  %vm1925_vm6 = vcmask 48144  }
 0x21a   :  { %v2838_v55 = vpop.permute.xlu2 %954  ;;  %v2866_v48 = vsel %vm689_vm15, %v691_v42, %v687_v40 }
 0x21b   :  { %v1015_v33 = vmul.f32 %v2883_v1, %v2838_v55 }
 0x21c   :  { %v2270_v60 = vpop.eup %2269 }
 0x21d   :  { %v740_v0 = vmul.f32 %v2270_v60, %v513_v39  ;;  %vm745_vm8 = vweird.f32 %v2270_v60  ;;  %v2272_v34 = vpop.eup %2271 }
 0x21e   :  { %vm746_vm11 = vmor %vm744_vm10, %vm745_vm8  ;;  %v725_v39 = vmul.f32 %v2272_v34, %v2840_v58  ;;  %vm730_vm1 = vweird.f32 %v2272_v34 }
 0x21f   :  { %v741_v3 = vsub.f32 1.0, %v740_v0  ;;  %vm731_vm3 = vmor %vm729_vm2, %vm730_vm1 }
 0x220   :  { %2181 = vset.pattern.permute.xlu2 %v2337_v16  ;;  %v726_v61 = vsub.f32 1.0, %v725_v39 }
 0x221   :  { %2178 = vset.pattern.permute.xlu1 %v2337_v16  ;;  %889 = vperm.xlu2 %2181, %v2774_v62   ;;  %v2847_v6 = vpop.permute.xlu1 %853  ;;  %v2849_v2 = vpop.permute.xlu0 %757  ;;  %v742_v9 = vmul.f32 %v2270_v60, %v741_v3  ;;  %v2885_v3 = vperm.slane %v754_v54, 0 }
 0x222   :  { %885 = vperm.xlu1 %2178, %v2832_v24   ;;  %v2852_v19 = vpop.permute.xlu2 %958  ;;  %2192 = vset.pattern.permute.xlu0 %v2338_v17  ;;  %v727_v30 = vmul.f32 %v2272_v34, %v726_v61 }
 0x223   :  { %v743_v27 = vadd.f32 %v2270_v60, %v742_v9 }
 0x224   :  { %v728_v15 = vadd.f32 %v2272_v34, %v727_v30 }
 0x225   :  { %v747_v36 = vsel %vm746_vm11, %v2270_v60, %v743_v27  ;;  %v2880_v60 = vperm.slane %v754_v54, 1 }
 0x226   :  { %v2860_v25 = vsel %vm749_vm13, %v751_v28, %v747_v36  ;;  %v733_v28 = vand.u32 2147483647, %v2840_v58  ;;  %v2900_v36 = vperm.slane %v754_v54, 3  ;;  %v732_v42 = vsel %vm731_vm3, %v2272_v34, %v728_v15 }
 0x227   :  { %832 = vperm.xlu0 %2192, %v2860_v25   ;;  %v918_v21 = vmul.f32 %v2880_v60, %v2812_v23  ;;  %v736_v23 = vor.u32 1.1754944e-38, %v735_v22  ;;  %v836_v15 = vmul.f32 %v2885_v3, %v2849_v2 }
 0x228   :  { %vm734_vm4 = vcmp.eq.f32.partialorder %v733_v28, 8.507059e+37 }
 0x229   :  { %2184 = vset.pattern.permute.xlu2 %v2338_v17 }
 0x22a   :  { %2179 = vset.pattern.permute.xlu1 %v3710_v13  ;;  %812 = vperm.xlu2 %2184, %v2866_v48   ;;  %v2870_v46 = vpop.permute.xlu1 %1047 }
 0x22b   :  { %982 = vperm.xlu1 %2179, %v2832_v24   ;;  %v951_v49 = vpop.permute.xlu0 %950  ;;  %v2873_v31 = vpop.permute.xlu2 %1059 }
 0x22f   :  { %2196 = vset.pattern.permute.xlu0 %v2339_v18 }
 0x230   :  { %1091 = vperm.xlu0 %2196, %v2866_v48  }
 0x232   :  { %2187 = vset.pattern.permute.xlu2 %v2337_v16  ;;  %v1052_v0 = vpop.permute.xlu1 %1051 }
 0x233   :  { %2182 = vset.pattern.permute.xlu1 %v2338_v17  ;;  %901 = vperm.xlu2 %2187, %v2805_v10   ;;  %v1112_v39 = vmul.f32 %v2900_v36, %v1052_v0  ;;  %v917_v0 = vmul.f32 %v2880_v60, %v2847_v6 }
 0x234   :  { %807 = vperm.xlu1 %2182, %v2785_v12   ;;  %v763_v4 = vpop.permute.xlu0 %762  ;;  %v2890_v9 = vpop.permute.xlu2 %777 }
 0x235   :  { %v837_v27 = vmul.f32 %v2885_v3, %v763_v4  ;;  %v2904_v4 = vsel %vm734_vm4, %v736_v23, %v732_v42  ;;  %v933_v28 = vadd.f32 %v917_v0, %v836_v15  ;;  %v1111_v42 = vmul.f32 %v2900_v36, %v2870_v46 }
 0x237   :  { %v934_v40 = vadd.f32 %v918_v21, %v837_v27  ;;  %v1014_v21 = vmul.f32 %v2883_v1, %v951_v49 }
 0x239   :  { %v1031_v61 = vadd.f32 %v1015_v33, %v934_v40  ;;  %v1030_v40 = vadd.f32 %v1014_v21, %v933_v28 }
 0x23b   :  { %2190 = vset.pattern.permute.xlu2 %v2338_v17  ;;  %v768_v30 = vpop.permute.xlu1 %767  ;;  %v1128_v13 = vadd.f32 %v1112_v39, %v1031_v61  ;;  %v1127_v61 = vadd.f32 %v1111_v42, %v1030_v40 }
 0x23c   :  { %2185 = vset.pattern.permute.xlu1 %v2337_v16  ;;  %827 = vperm.xlu2 %2190, %v2904_v4   ;;  %v838_v34 = vmul.f32 %v2885_v3, %v768_v30 }
 0x23d   :  { %897 = vperm.xlu1 %2185, %v2866_v48   ;;  %1161 = vrot.lane.b32.xlu0 %v1128_v13, %s2341_s10  ;;  %v862_v55 = vpop.permute.xlu0 %861  ;;  %v870_v58 = vpop.permute.xlu2 %869  ;;  %v1016_v13 = vmul.f32 %v2883_v1, %v2852_v19 }
 0x23e   :  { %v919_v54 = vmul.f32 %v2880_v60, %v862_v55  ;;  %v921_v21 = vmul.f32 %v2880_v60, %v870_v58 }
 0x240   :  { %v935_v27 = vadd.f32 %v919_v54, %v838_v34  ;;  %v3718_v54 = vmov 2  }
 0x242   :  { %v1032_v2 = vadd.f32 %v1016_v13, %v935_v27 }
 0x243   :  { %v773_v22 = vpop.permute.xlu1 %772 }
 0x244   :  { %2193 = vset.pattern.permute.xlu2 %v2337_v16  ;;  %v839_v30 = vmul.f32 %v2885_v3, %v773_v22  ;;  %v840_v22 = vmul.f32 %v2885_v3, %v2890_v9 }
 0x245   :  { %2188 = vset.pattern.permute.xlu1 %v2338_v17  ;;  %913 = vperm.xlu2 %2193, %v2860_v25  }
 0x246   :  { %822 = vperm.xlu1 %2188, %v2828_v43   ;;  %v1056_v6 = vpop.permute.xlu0 %1055  ;;  %v1064_v33 = vpop.permute.xlu2 %1063 }
 0x247   :  { %v1113_v49 = vmul.f32 %v2900_v36, %v1056_v6  ;;  %v937_v6 = vadd.f32 %v921_v21, %v840_v22 }
 0x249   :  { %v1129_v39 = vadd.f32 %v1113_v49, %v1032_v2 }
 0x24b   :  { %1163 = vrot.lane.b32.xlu0 %v1129_v39, %s2341_s10 }
 0x24c   :  { %v866_v19 = vpop.permute.xlu1 %865 }
 0x24d   :  { %1159 = vrot.lane.b32.xlu2 %v1127_v61, %s2341_s10  ;;  %v920_v23 = vmul.f32 %v2880_v60, %v866_v19 }
 0x24e   :  { %2191 = vset.pattern.permute.xlu1 %v2337_v16  ;;  %2194 = vset.pattern.permute.xlu2 %v2339_v18  ;;  %v1114_v16 = vmul.f32 %v2900_v36, %v2873_v31  ;;  %v1115_v31 = vmul.f32 %v2900_v36, %v1064_v33 }
 0x24f   :  { %909 = vperm.xlu1 %2191, %v2904_v4   ;;  %v783_v17 = vpop.permute.xlu2 %782  ;;  %v936_v46 = vadd.f32 %v920_v23, %v839_v30  ;;  %v971_v28 = vpop.permute.xlu0 %970 }
 0x250   :  { %v841_v19 = vmul.f32 %v2885_v3, %v783_v17  ;;  %v1019_v33 = vmul.f32 %v2883_v1, %v971_v28 }
 0x255   :  { %v963_v55 = vpop.permute.xlu1 %962  ;;  %1079 = vperm.xlu2 %2194, %v2832_v24  }
 0x256   :  { %v1017_v34 = vmul.f32 %v2883_v1, %v963_v55 }
 0x257   :  { %2195 = vset.pattern.permute.xlu1 %v3718_v54 }
 0x258   :  { %v1033_v0 = vadd.f32 %v1017_v34, %v936_v46  ;;  %986 = vperm.xlu1 %2195, %v2774_v62   ;;  %v878_v15 = vpop.permute.xlu2 %877  ;;  %v788_v42 = vpop.permute.xlu0 %787 }
 0x259   :  { %v842_v17 = vmul.f32 %v2885_v3, %v788_v42  ;;  %v923_v21 = vmul.f32 %v2880_v60, %v878_v15 }
 0x25a   :  { %v1130_v27 = vadd.f32 %v1114_v16, %v1033_v0 }
 0x25b   :  { %v939_v28 = vadd.f32 %v923_v21, %v842_v17 }
 0x25c   :  { %1165 = vrot.lane.b32.xlu0 %v1130_v27, %s2341_s10 }
 0x25d   :  { %v967_v13 = vpop.permute.xlu1 %966  ;;  %1083 = vperm.xlu2 %2194, %v2774_v62  }
 0x25e   :  { %v1018_v40 = vmul.f32 %v2883_v1, %v967_v13 }
 0x260   :  { %v1034_v2 = vadd.f32 %v1018_v40, %v937_v6  ;;  %990 = vperm.xlu1 %2195, %v2785_v12  }
 0x261   :  { %v1072_v49 = vpop.permute.xlu2 %1071  ;;  %v882_v30 = vpop.permute.xlu0 %881 }
 0x262   :  { %v1131_v58 = vadd.f32 %v1115_v31, %v1034_v2  ;;  %v1117_v6 = vmul.f32 %v2900_v36, %v1072_v49 }
 0x264   :  { %1167 = vrot.lane.b32.xlu0 %v1131_v58, %s2341_s10 }
 0x265   :  { %1087 = vperm.xlu2 %2194, %v2785_v12  }
 0x266   :  { %v874_v9 = vpop.permute.xlu1 %873 }
 0x267   :  { %v922_v39 = vmul.f32 %v2880_v60, %v874_v9 }
 0x268   :  { %994 = vperm.xlu1 %2195, %v2866_v48  }
 0x269   :  { %v1076_v61 = vpop.permute.xlu2 %1075  ;;  %v938_v23 = vadd.f32 %v922_v39, %v841_v19 }
 0x26a   :  { %v803_v22 = vpop.permute.xlu0 %802  ;;  %v1118_v17 = vmul.f32 %v2900_v36, %v1076_v61 }
 0x26b   :  { %v1035_v46 = vadd.f32 %v1019_v33, %v938_v23  ;;  %v845_v2 = vmul.f32 %v2885_v3, %v803_v22  ;;  %v924_v23 = vmul.f32 %v2880_v60, %v882_v30 }
 0x26d   :  { %2197 = vset.pattern.permute.xlu2 %v3718_v54 }
 0x26e   :  { %998 = vperm.xlu2 %2197, %v2805_v10  }
 0x26f   :  { %v1068_v55 = vpop.permute.xlu1 %1067 }
 0x270   :  { %1002 = vperm.xlu1 %2195, %v2828_v43   ;;  %v1116_v34 = vmul.f32 %v2900_v36, %v1068_v55 }
 0x272   :  { %v1132_v16 = vadd.f32 %v1116_v34, %v1035_v46  ;;  %v798_v0 = vpop.permute.xlu2 %797 }
 0x273   :  { %v2972_v39 = vpop.permute.xlu0 %893 }
 0x274   :  { %1169 = vrot.lane.b32.xlu0 %v1132_v16, %s2341_s10 }
 0x276   :  { %2198 = vset.pattern.permute.xlu2 %v2339_v18 }
 0x277   :  { %1095 = vperm.xlu2 %2198, %v2805_v10  }
 0x278   :  { %v975_v27 = vpop.permute.xlu1 %974  ;;  %2200 = vset.pattern.permute.xlu1 %v2339_v18 }
 0x279   :  { %v1020_v13 = vmul.f32 %v2883_v1, %v975_v27 }
 0x27b   :  { %v1036_v40 = vadd.f32 %v1020_v13, %v939_v28  ;;  %v890_v31 = vpop.permute.xlu2 %889 }
 0x27c   :  { %v926_v58 = vmul.f32 %v2880_v60, %v890_v31  ;;  %1099 = vperm.xlu0 %2196, %v2828_v43  }
 0x27d   :  { %v1133_v15 = vadd.f32 %v1117_v6, %v1036_v40 }
 0x27e   :  { %v2968_v42 = vadd.f32 %v926_v58, %v845_v2 }
 0x27f   :  { %1171 = vrot.lane.b32.xlu1 %v1133_v15, %s2341_s10  ;;  %2199 = vset.pattern.permute.xlu2 %v3718_v54 }
 0x281   :  { %v793_v9 = vpop.permute.xlu1 %792 }
 0x282   :  { %v843_v49 = vmul.f32 %v2885_v3, %v793_v9  ;;  %v818_v33 = vpop.permute.xlu0 %817 }
 0x283   :  { %v848_v21 = vmul.f32 %v2885_v3, %v818_v33 }
 0x284   :  { %v2974_v19 = vpop.permute.xlu2 %812  ;;  %2201 = vset.pattern.permute.xlu0 %v3718_v54  ;;  %v940_v46 = vadd.f32 %v924_v23, %v843_v49 }
 0x28b   :  { %v979_v55 = vpop.permute.xlu1 %978  ;;  %v2986_v30 = vpop.permute.xlu0 %905 }
 0x28c   :  { %v1021_v34 = vmul.f32 %v2883_v1, %v979_v55 }
 0x28d   :  { %v902_v16 = vpop.permute.xlu2 %901 }
 0x28e   :  { %v1037_v27 = vadd.f32 %v1021_v34, %v940_v46  ;;  %v929_v28 = vmul.f32 %v2880_v60, %v902_v16 }
 0x290   :  { %v2983_v22 = vadd.f32 %v929_v28, %v848_v21  ;;  %v1134_v54 = vadd.f32 %v1118_v17, %v1037_v27  ;;  %v844_v28 = vmul.f32 %v2885_v3, %v798_v0 }
 0x292   :  { %1173 = vrot.lane.b32.xlu0 %v1134_v54, %s2341_s10 }
 0x294   :  { %v886_v13 = vpop.permute.xlu1 %885 }
 0x295   :  { %v925_v17 = vmul.f32 %v2880_v60, %v886_v13 }
 0x296   :  { %v828_v6 = vpop.permute.xlu2 %827 }
 0x299   :  { %v833_v40 = vpop.permute.xlu0 %832 }
 0x29a   :  { %v851_v58 = vmul.f32 %v2885_v3, %v833_v40  ;;  %v941_v40 = vadd.f32 %v925_v17, %v844_v28 }
 0x29d   :  { %v983_v31 = vpop.permute.xlu1 %982 }
 0x29e   :  { %v1022_v54 = vmul.f32 %v2883_v1, %v983_v31 }
 0x29f   :  { %v914_v2 = vpop.permute.xlu2 %913 }
 0x2a0   :  { %v932_v61 = vmul.f32 %v2880_v60, %v914_v2 }
 0x2a2   :  { %v2990_v15 = vadd.f32 %v932_v61, %v851_v58  ;;  %v2992_v49 = vpop.permute.xlu0 %1091  ;;  %v1038_v58 = vadd.f32 %v1022_v54, %v941_v40 }
 0x2a6   :  { %v808_v9 = vpop.permute.xlu1 %807 }
 0x2a7   :  { %v1160_v23 = vpop.permute.xlu2 %1159 }
 0x2a8   :  { %v1207_v33 = vadd.f32 %v1160_v23, %v2501_v26 }
 0x2aa   :  { %v1223_v55 = vmax.f32 %v1207_v33, 0.0 }
 0x2ac   :  { %1263 = vrot.lane.b32.xlu2 %v1223_v55, %s2342_s15  ;;  %v850_v55 = vmul.f32 %v2885_v3, %v828_v6 }
 0x2af   :  { %v898_v46 = vpop.permute.xlu1 %897  ;;  %v1162_v34 = vpop.permute.xlu0 %1161 }
 0x2b0   :  { %v1208_v16 = vadd.f32 %v1162_v34, %v2506_v29  ;;  %v1080_v27 = vpop.permute.xlu2 %1079 }
 0x2b1   :  { %v1119_v2 = vmul.f32 %v2900_v36, %v1080_v27 }
 0x2b2   :  { %v1224_v21 = vmax.f32 %v1208_v16, 0.0 }
 0x2b3   :  { %v1135_v23 = vadd.f32 %v1119_v2, %v1038_v58 }
 0x2b4   :  { %1265 = vrot.lane.b32.xlu1 %v1224_v21, %s2342_s15  ;;  %1006 = vperm.xlu2 %2199, %v2904_v4  }
 0x2b8   :  { %v3003_v61 = vpop.permute.xlu1 %822  ;;  %v1084_v17 = vpop.permute.xlu2 %1083 }
 0x2b9   :  { %v1120_v28 = vmul.f32 %v2900_v36, %v1084_v17 }
 0x2bc   :  { %1175 = vrot.lane.b32.xlu1 %v1135_v23, %s2341_s10  ;;  %2202 = vset.pattern.permute.xlu2 %v2339_v18 }
 0x2bd   :  { %v1164_v13 = vpop.permute.xlu0 %1163 }
 0x2be   :  { %v1209_v0 = vadd.f32 %v1164_v13, %v2511_v32 }
 0x2c0   :  { %v1225_v33 = vmax.f32 %v1209_v0, 0.0  ;;  %v1088_v13 = vpop.permute.xlu2 %1087 }
 0x2c1   :  { %v910_v31 = vpop.permute.xlu1 %909 }
 0x2c2   :  { %v931_v34 = vmul.f32 %v2880_v60, %v910_v31  ;;  %1267 = vrot.lane.b32.xlu2 %v1225_v33, %s2342_s15  ;;  %v846_v33 = vmul.f32 %v2885_v3, %v808_v9  ;;  %v928_v31 = vmul.f32 %v2880_v60, %v898_v46 }
 0x2c4   :  { %v3011_v16 = vadd.f32 %v931_v34, %v850_v55  ;;  %1103 = vperm.xlu1 %2200, %v2904_v4   ;;  %v847_v34 = vmul.f32 %v2885_v3, %v2974_v19  ;;  %v1241_v19 = vld [vmem:[%s3706_s7 + $0x10] sm:$0xff] }
 0x2ca   :  { %v987_v21 = vpop.permute.xlu1 %986 }
 0x2cb   :  { %v1023_v27 = vmul.f32 %v2883_v1, %v987_v21 }
 0x2cd   :  { %v1039_v54 = vadd.f32 %v1023_v27, %v2968_v42  ;;  %v927_v42 = vmul.f32 %v2880_v60, %v2972_v39  ;;  %v1242_v39 = vld [vmem:[%s3706_s7 + $0x18] sm:$0xff] }
 0x2ce   :  { %v1166_v40 = vpop.permute.xlu0 %1165  ;;  %1339 = vmatpush.msra.mxu3 %v1242_v39  ;;  %v930_v39 = vmul.f32 %v2880_v60, %v2986_v30 }
 0x2cf   :  { %v1210_v2 = vadd.f32 %v1166_v40, %v2516_v35  ;;  %v1136_v6 = vadd.f32 %v1120_v28, %v1039_v54  ;;  %v943_v28 = vadd.f32 %v927_v42, %v846_v33  ;;  %v944_v54 = vadd.f32 %v928_v31, %v847_v34  ;;  %v1240_v33 = vld [vmem:[%s3706_s7 + $0x8] sm:$0xff] }
 0x2d0   :  { %1340 = vmatpush.msra.mxu3 %v1241_v19 }
 0x2d1   :  { %v1226_v58 = vmax.f32 %v1210_v2, 0.0  ;;  %1177 = vrot.lane.b32.xlu2 %v1136_v6, %s2341_s10  ;;  %v1122_v2 = vmul.f32 %v2900_v36, %v2992_v49  ;;  %v1121_v6 = vmul.f32 %v2900_v36, %v1088_v13  ;;  %v1239_v49 = vld [vmem:[%s3706_s7] sm:$0xff]  ;;  %s2343_s7 = smov 64  }
 0x2d2   :  { %v991_v23 = vpop.permute.xlu1 %990  ;;  %1341 = vmatpush.msra.mxu3 %v1240_v33 }
 0x2d3   :  { %1269 = vrot.lane.b32.xlu0 %v1226_v58, %s2342_s15  ;;  %v1024_v17 = vmul.f32 %v2883_v1, %v991_v23  ;;  %v999_v58 = vpop.permute.xlu2 %998 }
 0x2d4   :  { %1342 = vmatpush.msra.mxu3 %v1239_v49 }
 0x2d5   :  { %v1040_v46 = vadd.f32 %v1024_v17, %v943_v28  ;;  %v1026_v17 = vmul.f32 %v2883_v1, %v999_v58 }
 0x2d6   :  { %v1168_v0 = vpop.permute.xlu0 %1167 }
 0x2d7   :  { %v1211_v55 = vadd.f32 %v1168_v0, %v2521_v38  ;;  %v1137_v0 = vadd.f32 %v1121_v6, %v1040_v46 }
 0x2d9   :  { %v1227_v21 = vmax.f32 %v1211_v55, 0.0  ;;  %1107 = vperm.xlu2 %2202, %v2860_v25  }
 0x2da   :  { %v995_v27 = vpop.permute.xlu1 %994 }
 0x2db   :  { %v1025_v9 = vmul.f32 %v2883_v1, %v995_v27  ;;  %1010 = vperm.xlu0 %2201, %v2860_v25   ;;  %1271 = vrot.lane.b32.xlu1 %v1227_v21, %s2342_s15  ;;  %v1096_v34 = vpop.permute.xlu2 %1095 }
 0x2dc   :  { %v1123_v21 = vmul.f32 %v2900_v36, %v1096_v34 }
 0x2dd   :  { %v1041_v40 = vadd.f32 %v1025_v9, %v944_v54  ;;  %v849_v9 = vmul.f32 %v2885_v3, %v3003_v61 }
 0x2df   :  { %v1138_v23 = vadd.f32 %v1122_v2, %v1041_v40  ;;  %v946_v2 = vadd.f32 %v930_v39, %v849_v9 }
 0x2e2   :  { %v1003_v55 = vpop.permute.xlu1 %1002 }
 0x2e3   :  { %1181 = vrot.lane.b32.xlu0 %v1138_v23, %s2341_s10  ;;  %1179 = vrot.lane.b32.xlu1 %v1137_v0, %s2341_s10  ;;  %v1027_v19 = vmul.f32 %v2883_v1, %v1003_v55 }
 0x2e4   :  { %2203 = vset.pattern.permute.xlu0 %v2339_v18  ;;  %v1042_v18 = vadd.f32 %v1026_v17, %v2983_v22 }
 0x2e5   :  { %v1043_v6 = vadd.f32 %v1027_v19, %v946_v2 }
 0x2e6   :  { %v1170_v31 = vpop.permute.xlu0 %1169  ;;  %v1139_v27 = vadd.f32 %v1123_v21, %v1042_v18 }
 0x2e7   :  { %v1212_v13 = vadd.f32 %v1170_v31, %v2526_v41 }
 0x2e9   :  { %v1228_v42 = vmax.f32 %v1212_v13, 0.0 }
 0x2eb   :  { %1273 = vrot.lane.b32.xlu2 %v1228_v42, %s2342_s15 }
 0x2ee   :  { %v1100_v40 = vpop.permute.xlu0 %1099 }
 0x2ef   :  { %v1124_v22 = vmul.f32 %v2900_v36, %v1100_v40 }
 0x2f1   :  { %v1172_v28 = vpop.permute.xlu1 %1171  ;;  %v1140_v58 = vadd.f32 %v1124_v22, %v1043_v6 }
 0x2f2   :  { %v1213_v54 = vadd.f32 %v1172_v28, %v2531_v44 }
 0x2f3   :  { %1183 = vrot.lane.b32.xlu2 %v1139_v27, %s2341_s10 }
 0x2f4   :  { %v1229_v46 = vmax.f32 %v1213_v54, 0.0 }
 0x2f6   :  { %1275 = vrot.lane.b32.xlu1 %v1229_v46, %s2342_s15 }
 0x2fe   :  { %1185 = vrot.lane.b32.xlu1 %v1140_v58, %s2341_s10 }
 0x304   :  { %v1174_v23 = vpop.permute.xlu0 %1173 }
 0x305   :  { %v1214_v0 = vadd.f32 %v1174_v23, %v2536_v47 }
 0x306   :  { %v1264_v3 = vpop.permute.xlu2 %1263 }
 0x307   :  { %v1230_v61 = vmax.f32 %v1214_v0, 0.0  ;;  %2108 = vmatmul.msk.f32.vlgmr.msra.gmra.mxu3 %vm62_vm0, %v1264_v3 }
 0x309   :  { %1277 = vrot.lane.b32.xlu0 %v1230_v61, %s2342_s15 }
 0x30e   :  { %v1007_v60 = vpop.permute.xlu2 %1006 }
 0x30f   :  { %v1028_v17 = vmul.f32 %v2883_v1, %v1007_v60 }
 0x311   :  { %v1044_v18 = vadd.f32 %v1028_v17, %v3011_v16 }
 0x31c   :  { %v1268_v30 = vpop.permute.xlu2 %1267 }
 0x326   :  { %v1266_v33 = vpop.permute.xlu1 %1265 }
 0x327   :  { %2109 = vmatmul.msk.f32.gmra.mxu3 %vm62_vm0, %v1266_v33 }
 0x32b   :  { %v1178_v31 = vpop.permute.xlu2 %1177 }
 0x32c   :  { %v1216_v49 = vadd.f32 %v1178_v31, %v2546_v53 }
 0x32e   :  { %v1232_v13 = vmax.f32 %v1216_v49, 0.0  ;;  %v1176_v55 = vpop.permute.xlu1 %1175 }
 0x32f   :  { %v1215_v42 = vadd.f32 %v1176_v55, %v2541_v50  ;;  %2110 = vmatmul.msk.f32.gmra.mxu3 %vm62_vm0, %v1268_v30 }
 0x330   :  { %1281 = vrot.lane.b32.xlu1 %v1232_v13, %s2342_s15 }
 0x331   :  { %v1231_v34 = vmax.f32 %v1215_v42, 0.0 }
 0x333   :  { %1279 = vrot.lane.b32.xlu2 %v1231_v34, %s2342_s15  ;;  %v1108_v54 = vpop.permute.xlu2 %1107 }
 0x334   :  { %v1126_v2 = vmul.f32 %v2900_v36, %v1108_v54 }
 0x336   :  { %v1104_v21 = vpop.permute.xlu1 %1103 }
 0x337   :  { %v1125_v27 = vmul.f32 %v2900_v36, %v1104_v21 }
 0x339   :  { %v1141_v28 = vadd.f32 %v1125_v27, %v1044_v18 }
 0x33b   :  { %1187 = vrot.lane.b32.xlu0 %v1141_v28, %s2341_s10 }
 0x345   :  { %v1270_v9 = vpop.permute.xlu0 %1269  ;;  %v1274_v46 = vpop.permute.xlu2 %1273 }
 0x346   :  { %2111 = vmatmul.msk.f32.gmra.mxu3 %vm62_vm0, %v1270_v9 }
 0x34d   :  { %v1272_v40 = vpop.permute.xlu1 %1271  ;;  %v1011_v39 = vpop.permute.xlu0 %1010 }
 0x34e   :  { %2112 = vmatmul.msk.f32.gmra.mxu3 %vm62_vm0, %v1272_v40  ;;  %v1029_v19 = vmul.f32 %v2883_v1, %v1011_v39  ;;  %v1184_v6 = vpop.permute.xlu2 %1183 }
 0x34f   :  { %v1219_v3 = vadd.f32 %v1184_v6, %v2564_v63 }
 0x350   :  { %v1045_v16 = vadd.f32 %v1029_v19, %v2990_v15 }
 0x351   :  { %v1235_v36 = vmax.f32 %v1219_v3, 0.0 }
 0x352   :  { %v1142_v22 = vadd.f32 %v1126_v2, %v1045_v16 }
 0x354   :  { %1189 = vrot.lane.b32.xlu2 %v1142_v22, %s2341_s10 }
 0x355   :  { %v1180_v58 = vpop.permute.xlu1 %1179  ;;  %v1182_v0 = vpop.permute.xlu0 %1181 }
 0x356   :  { %v1217_v23 = vadd.f32 %v1180_v58, %v2551_v56  ;;  %2113 = vmatmul.msk.f32.gmra.mxu3 %vm62_vm0, %v1274_v46  ;;  %v1218_v61 = vadd.f32 %v1182_v0, %v2556_v59 }
 0x358   :  { %v1233_v60 = vmax.f32 %v1217_v23, 0.0  ;;  %v1234_v1 = vmax.f32 %v1218_v61, 0.0 }
 0x35a   :  { %1283 = vrot.lane.b32.xlu0 %v1233_v60, %s2342_s15  ;;  %1285 = vrot.lane.b32.xlu1 %v1234_v1, %s2342_s15 }
 0x35c   :  { %1287 = vrot.lane.b32.xlu2 %v1235_v36, %s2342_s15 }
 0x368   :  { %v1276_v15 = vpop.permute.xlu1 %1275 }
 0x369   :  { %2114 = vmatmul.msk.f32.gmra.mxu3 %vm62_vm0, %v1276_v15 }
 0x370   :  { %v1186_v30 = vpop.permute.xlu1 %1185 }
 0x371   :  { %v1220_v33 = vadd.f32 %v1186_v30, %v2578_v5 }
 0x373   :  { %v1236_v31 = vmax.f32 %v1220_v33, 0.0 }
 0x375   :  { %1289 = vrot.lane.b32.xlu0 %v1236_v31, %s2342_s15 }
 0x37b   :  { %v1278_v49 = vpop.permute.xlu0 %1277 }
 0x37c   :  { %2115 = vmatmul.msk.f32.gmra.mxu3 %vm62_vm0, %v1278_v49 }
 0x37d   :  { %1812 = vrot.lane.b32.xlu0 %v2501_v26, %s2343_s7 }
 0x385   :  { %1818 = vrot.lane.b32.xlu0 %v2516_v35, %s2343_s7 }
 0x38d   :  { %v1280_v13 = vpop.permute.xlu2 %1279  ;;  %1822 = vrot.lane.b32.xlu0 %v2526_v41, %s2343_s7 }
 0x38e   :  { %2116 = vmatmul.msk.f32.gmra.mxu3 %vm62_vm0, %v1280_v13 }
 0x395   :  { %1828 = vrot.lane.b32.xlu0 %v2541_v50, %s2343_s7 }
 0x39d   :  { %1834 = vrot.lane.b32.xlu0 %v2556_v59, %s2343_s7  ;;  %v1344_v59 = vpop.f32.mrf.mxu3 }
 0x3a2   :  { %v1282_v55 = vpop.permute.xlu1 %1281 }
 0x3a3   :  { %2117 = vmatmul.msk.f32.gmra.mxu3 %vm62_vm0, %v1282_v55 }
 0x3a5   :  { %1840 = vrot.lane.b32.xlu0 %v2583_v8, %s2343_s7 }
 0x3ad   :  { %v1188_v26 = vpop.permute.xlu0 %1187  ;;  %1879 = vrot.lane.b32.xlu0 %v2653_v14, %s2344_s24 }
 0x3ae   :  { %v1221_v35 = vadd.f32 %v1188_v26, %v2583_v8  ;;  %v1190_v41 = vpop.permute.xlu2 %1189  ;;  %v3129_v8 = vpop.f32.mrf.mxu3 }
 0x3af   :  { %v1222_v50 = vadd.f32 %v1190_v41, %v2588_v11 }
 0x3b0   :  { %v1237_v42 = vmax.f32 %v1221_v35, 0.0 }
 0x3b1   :  { %v1238_v34 = vmax.f32 %v1222_v50, 0.0 }
 0x3b2   :  { %1291 = vrot.lane.b32.xlu1 %v1237_v42, %s2342_s15 }
 0x3b3   :  { %1293 = vrot.lane.b32.xlu2 %v1238_v34, %s2342_s15 }
 0x3b5   :  { %1885 = vrot.lane.b32.xlu0 %v2728_v45, %s2344_s24 }
 0x3ba   :  { %1814 = vrot.lane.b32.xlu1 %v2506_v29, %s2343_s7 }
 0x3bb   :  { %1816 = vrot.lane.b32.xlu2 %v2511_v32, %s2343_s7  ;;  %v1350_v32 = vpop.f32.mrf.mxu3 }
 0x3bd   :  { %1891 = vrot.lane.b32.xlu0 %v2764_v37, %s2344_s24 }
 0x3c2   :  { %1820 = vrot.lane.b32.xlu1 %v2521_v38, %s2343_s7 }
 0x3c3   :  { %1824 = vrot.lane.b32.xlu2 %v2531_v44, %s2343_s7 }
 0x3c5   :  { %1897 = vrot.lane.b32.xlu0 %v2785_v12, %s2344_s24 }
 0x3c9   :  { %v3145_v44 = vpop.f32.mrf.mxu3 }
 0x3ca   :  { %1826 = vrot.lane.b32.xlu1 %v2536_v47, %s2343_s7  ;;  %v1288_v47 = vpop.permute.xlu2 %1287 }
 0x3cb   :  { %1830 = vrot.lane.b32.xlu2 %v2546_v53, %s2343_s7 }
 0x3cc   :  { %v1284_v29 = vpop.permute.xlu0 %1283  ;;  %v1286_v38 = vpop.permute.xlu1 %1285 }
 0x3cd   :  { %1903 = vrot.lane.b32.xlu0 %v2828_v43, %s2344_s24  ;;  %2118 = vmatmul.msk.f32.gmra.mxu3 %vm62_vm0, %v1284_v29 }
 0x3d1   :  { %v1356_v53 = vpop.f32.mrf.mxu3 }
 0x3d2   :  { %1832 = vrot.lane.b32.xlu1 %v2551_v56, %s2343_s7  ;;  %v3157_v56 = vld [vmem:[%s3707_s8] ss:$0 sm:$0xff] }
 0x3d3   :  { %1836 = vrot.lane.b32.xlu2 %v2564_v63, %s2343_s7  ;;  %v1357_v45 = vadd.f32 %v3157_v56, %v1356_v53  ;;  %v1351_v46 = vadd.f32 %v3157_v56, %v1350_v32  ;;  %v1348_v16 = vadd.f32 %v3157_v56, %v3129_v8  ;;  %v1354_v22 = vadd.f32 %v3157_v56, %v3145_v44 }
 0x3d5   :  { %2119 = vmatmul.msk.f32.gmra.mxu3 %vm62_vm0, %v1286_v38  ;;  %v1394_v40 = vmax.f32 %v1351_v46, 0.0  ;;  %v1393_v58 = vmax.f32 %v1348_v16, 0.0  ;;  %v1395_v23 = vmax.f32 %v1354_v22, 0.0 }
 0x3d9   :  { %v1359_v14 = vpop.f32.mrf.mxu3 }
 0x3da   :  { %1838 = vrot.lane.b32.xlu1 %v2578_v5, %s2343_s7  ;;  %v1345_v5 = vadd.f32 %v3157_v56, %v1344_v59  ;;  %v1360_v1 = vadd.f32 %v3157_v56, %v1359_v14 }
 0x3db   :  { %1842 = vrot.lane.b32.xlu2 %v2588_v11, %s2343_s7 }
 0x3dc   :  { %v1392_v11 = vmax.f32 %v1345_v5, 0.0  ;;  %v1397_v31 = vmax.f32 %v1360_v1, 0.0 }
 0x3dd   :  { %2120 = vmatmul.msk.f32.gmra.mxu3 %vm62_vm0, %v1288_v47 }
 0x3e2   :  { %1877 = vrot.lane.b32.xlu1 %v2644_v57, %s2344_s24  ;;  %v3168_v57 = vld [vmem:[%s3708_s9] ss:$0 sm:$0xff] }
 0x3e3   :  { %1881 = vrot.lane.b32.xlu2 %v2681_v52, %s2344_s24  ;;  %v1414_v6 = vmul.f32 %v3168_v57, %v1394_v40  ;;  %v1413_v15 = vmul.f32 %v3168_v57, %v1393_v58  ;;  %v1415_v33 = vmul.f32 %v3168_v57, %v1395_v23  ;;  %v1417_v50 = vmul.f32 %v3168_v57, %v1397_v31 }
 0x3e5   :  { %v1434_v3 = vsel %vm62_vm0, %v1414_v6, 0.0  ;;  %v1431_v49 = vsel %vm62_vm0, %v1413_v15, 0.0  ;;  %v1437_v26 = vsel %vm62_vm0, %v1415_v33, 0.0  ;;  %v1443_v32 = vsel %vm62_vm0, %v1417_v50, 0.0 }
 0x3e7   :  { %v1290_v63 = vpop.permute.xlu0 %1289 }
 0x3e8   :  { %2121 = vmatmul.msk.f32.gmra.mxu3 %vm62_vm0, %v1290_v63 }
 0x3ea   :  { %1883 = vrot.lane.b32.xlu1 %v2700_v7, %s2344_s24  ;;  %v1412_v7 = vmul.f32 %v3168_v57, %v1392_v11 }
 0x3eb   :  { %1887 = vrot.lane.b32.xlu2 %v2733_v51, %s2344_s24  ;;  %v1396_v51 = vmax.f32 %v1357_v45, 0.0 }
 0x3ec   :  { %v1428_v37 = vsel %vm62_vm0, %v1412_v7, 0.0  ;;  %v1362_v12 = vpop.f32.mrf.mxu3 }
 0x3ed   :  { %v1363_v30 = vadd.f32 %v3157_v56, %v1362_v12 }
 0x3ef   :  { %v1813_v52 = vpop.permute.xlu0 %1812  ;;  %v1398_v13 = vmax.f32 %v1363_v30, 0.0 }
 0x3f0   :  { %1861 = vst.msk [vmem:[%s3709_s11] sm:$0xff] %vm1860_vm5, %v1813_v52 }
 0x3f1   :  { %v1418_v59 = vmul.f32 %v3168_v57, %v1398_v13 }
 0x3f2   :  { %1889 = vrot.lane.b32.xlu1 %v2754_v20, %s2344_s24  ;;  %v1416_v20 = vmul.f32 %v3168_v57, %v1396_v51 }
 0x3f3   :  { %1893 = vrot.lane.b32.xlu2 %v2832_v24, %s2344_s24  ;;  %v1446_v47 = vsel %vm62_vm0, %v1418_v59, 0.0 }
 0x3f4   :  { %v1440_v24 = vsel %vm62_vm0, %v1416_v20, 0.0 }
 0x3f7   :  { %1429 = vadd.xlane.f32.xlu0 %v1428_v37  ;;  %v1819_v43 = vpop.permute.xlu0 %1818 }
 0x3f8   :  { %1864 = vst.msk [vmem:[%s3709_s11 + $0x18] sm:$0xff] %vm1860_vm5, %v1819_v43 }
 0x3fa   :  { %1895 = vrot.lane.b32.xlu1 %v2774_v62, %s2344_s24 }
 0x3fb   :  { %1899 = vrot.lane.b32.xlu2 %v2866_v48, %s2344_s24 }
 0x3ff   :  { %v1365_v17 = vpop.f32.mrf.mxu3  ;;  %1441 = vadd.xlane.f32.xlu0 %v1440_v24  ;;  %v1823_v21 = vpop.permute.xlu0 %1822 }
 0x400   :  { %v1366_v18 = vadd.f32 %v3157_v56, %v1365_v17  ;;  %1866 = vst.msk [vmem:[%s3709_s11 + $0x28] sm:$0xff] %vm1860_vm5, %v1823_v21 }
 0x402   :  { %v1399_v27 = vmax.f32 %v1366_v18, 0.0  ;;  %1901 = vrot.lane.b32.xlu1 %v2805_v10, %s2344_s24 }
 0x403   :  { %1905 = vrot.lane.b32.xlu2 %v2904_v4, %s2344_s24 }
 0x404   :  { %v1419_v62 = vmul.f32 %v3168_v57, %v1399_v27 }
 0x406   :  { %v1449_v48 = vsel %vm62_vm0, %v1419_v62, 0.0 }
 0x407   :  { %1450 = vadd.xlane.f32.xlu0 %v1449_v48  ;;  %v1829_v28 = vpop.permute.xlu0 %1828 }
 0x408   :  { %1869 = vst.msk [vmem:[%s3709_s11 + $0x40] sm:$0xff] %vm1860_vm5, %v1829_v28 }
 0x40a   :  { %1907 = vrot.lane.b32.xlu1 %v2860_v25, %s2344_s24 }
 0x40d   :  { %v1294_v54 = vpop.permute.xlu2 %1293 }
 0x40f   :  { %v1835_v9 = vpop.permute.xlu0 %1834 }
 0x410   :  { %1872 = vst.msk [vmem:[%s3709_s11 + $0x58] sm:$0xff] %vm1860_vm5, %v1835_v9 }
 0x411   :  { %v1368_v61 = vpop.f32.mrf.mxu3 }
 0x412   :  { %v1369_v42 = vadd.f32 %v3157_v56, %v1368_v61 }
 0x414   :  { %v1400_v29 = vmax.f32 %v1369_v42, 0.0 }
 0x415   :  { %v1817_v10 = vpop.permute.xlu2 %1816 }
 0x416   :  { %1863 = vst.msk [vmem:[%s3709_s11 + $0x10] sm:$0xff] %vm1860_vm5, %v1817_v10  ;;  %v1420_v63 = vmul.f32 %v3168_v57, %v1400_v29 }
 0x417   :  { %v1841_v4 = vpop.permute.xlu0 %1840 }
 0x418   :  { %1875 = vst.msk [vmem:[%s3709_s11 + $0x70] sm:$0xff] %vm1860_vm5, %v1841_v4  ;;  %v1452_v14 = vsel %vm62_vm0, %v1420_v63, 0.0 }
 0x41d   :  { %v1825_v25 = vpop.permute.xlu2 %1824 }
 0x41e   :  { %1867 = vst.msk [vmem:[%s3709_s11 + $0x30] sm:$0xff] %vm1860_vm5, %v1825_v25 }
 0x41f   :  { %v1880_v19 = vpop.permute.xlu0 %1879 }
 0x424   :  { %v1292_v39 = vpop.permute.xlu1 %1291 }
 0x425   :  { %2122 = vmatmul.msk.f32.gmra.mxu3 %vm62_vm0, %v1292_v39  ;;  %v1831_v2 = vpop.permute.xlu2 %1830 }
 0x426   :  { %1870 = vst.msk [vmem:[%s3709_s11 + $0x48] sm:$0xff] %vm1860_vm5, %v1831_v2  ;;  %v1371_v35 = vpop.f32.mrf.mxu3 }
 0x427   :  { %v1886_v36 = vpop.permute.xlu0 %1885  ;;  %v1372_v34 = vadd.f32 %v3157_v56, %v1371_v35 }
 0x429   :  { %v1401_v38 = vmax.f32 %v1372_v34, 0.0 }
 0x42b   :  { %v1421_v5 = vmul.f32 %v3168_v57, %v1401_v38 }
 0x42c   :  { %v1815_v0 = vpop.permute.xlu1 %1814  ;;  %1435 = vadd.xlane.f32.xlu2 %v1434_v3 }
 0x42d   :  { %1862 = vst.msk [vmem:[%s3709_s11 + $0x8] sm:$0xff] %vm1860_vm5, %v1815_v0  ;;  %2123 = vmatmul.msk.f32.gmra.mxu3 %vm62_vm0, %v1294_v54  ;;  %v1837_v60 = vpop.permute.xlu2 %1836  ;;  %v1455_v45 = vsel %vm62_vm0, %v1421_v5, 0.0 }
 0x42e   :  { %1927 = vst.msk [vmem:[%s3709_s11 + $0x8] sm:$0xff] %vm1925_vm6, %v1880_v19 }
 0x42f   :  { %1873 = vst.msk [vmem:[%s3709_s11 + $0x60] sm:$0xff] %vm1860_vm5, %v1837_v60  ;;  %v1892_v8 = vpop.permute.xlu0 %1891 }
 0x434   :  { %1432 = vadd.xlane.f32.xlu1 %v1431_v49  ;;  %v1821_v55 = vpop.permute.xlu1 %1820  ;;  %1438 = vadd.xlane.f32.xlu2 %v1437_v26 }
 0x435   :  { %1865 = vst.msk [vmem:[%s3709_s11 + $0x20] sm:$0xff] %vm1860_vm5, %v1821_v55  ;;  %v1843_v41 = vpop.permute.xlu2 %1842 }
 0x436   :  { %1930 = vst.msk [vmem:[%s3709_s11 + $0x20] sm:$0xff] %vm1925_vm6, %v1886_v36 }
 0x437   :  { %1876 = vst.msk [vmem:[%s3709_s11 + $0x78] sm:$0xff] %vm1860_vm5, %v1843_v41  ;;  %v1898_v11 = vpop.permute.xlu0 %1897 }
 0x43c   :  { %1444 = vadd.xlane.f32.xlu1 %v1443_v32  ;;  %v1827_v44 = vpop.permute.xlu1 %1826  ;;  %1447 = vadd.xlane.f32.xlu2 %v1446_v47 }
 0x43d   :  { %1868 = vst.msk [vmem:[%s3709_s11 + $0x38] sm:$0xff] %vm1860_vm5, %v1827_v44  ;;  %v1882_v53 = vpop.permute.xlu2 %1881 }
 0x43e   :  { %1933 = vst.msk [vmem:[%s3709_s11 + $0x38] sm:$0xff] %vm1925_vm6, %v1892_v8 }
 0x43f   :  { %1928 = vst.msk [vmem:[%s3709_s11 + $0x10] sm:$0xff] %vm1925_vm6, %v1882_v53  ;;  %v1904_v37 = vpop.permute.xlu0 %1903 }
 0x444   :  { %1453 = vadd.xlane.f32.xlu1 %v1452_v14  ;;  %v1833_v52 = vpop.permute.xlu1 %1832  ;;  %1456 = vadd.xlane.f32.xlu2 %v1455_v45 }
 0x445   :  { %1871 = vst.msk [vmem:[%s3709_s11 + $0x50] sm:$0xff] %vm1860_vm5, %v1833_v52  ;;  %v1888_v7 = vpop.permute.xlu2 %1887 }
 0x446   :  { %1936 = vst.msk [vmem:[%s3709_s11 + $0x50] sm:$0xff] %vm1925_vm6, %v1898_v11 }
 0x447   :  { %1931 = vst.msk [vmem:[%s3709_s11 + $0x28] sm:$0xff] %vm1925_vm6, %v1888_v7 }
 0x44c   :  { %v1839_v51 = vpop.permute.xlu1 %1838 }
 0x44d   :  { %1874 = vst.msk [vmem:[%s3709_s11 + $0x68] sm:$0xff] %vm1860_vm5, %v1839_v51  ;;  %v1894_v12 = vpop.permute.xlu2 %1893 }
 0x44e   :  { %1939 = vst.msk [vmem:[%s3709_s11 + $0x68] sm:$0xff] %vm1925_vm6, %v1904_v37 }
 0x44f   :  { %1934 = vst.msk [vmem:[%s3709_s11 + $0x40] sm:$0xff] %vm1925_vm6, %v1894_v12 }
 0x450   :  { %v1374_v43 = vpop.f32.mrf.mxu3 }
 0x451   :  { %v1375_v20 = vadd.f32 %v3157_v56, %v1374_v43 }
 0x453   :  { %v1402_v24 = vmax.f32 %v1375_v20, 0.0 }
 0x454   :  { %v1878_v17 = vpop.permute.xlu1 %1877 }
 0x455   :  { %1926 = vst.msk [vmem:[%s3709_s11] sm:$0xff] %vm1925_vm6, %v1878_v17  ;;  %v1422_v21 = vmul.f32 %v3168_v57, %v1402_v24  ;;  %v1900_v18 = vpop.permute.xlu2 %1899 }
 0x456   :  { %1937 = vst.msk [vmem:[%s3709_s11 + $0x58] sm:$0xff] %vm1925_vm6, %v1900_v18 }
 0x457   :  { %v1458_v27 = vsel %vm62_vm0, %v1422_v21, 0.0 }
 0x458   :  { %v1377_v62 = vpop.f32.mrf.mxu3  ;;  %1459 = vadd.xlane.f32.xlu0 %v1458_v27 }
 0x459   :  { %v1378_v48 = vadd.f32 %v3157_v56, %v1377_v62 }
 0x45b   :  { %v1403_v28 = vmax.f32 %v1378_v48, 0.0 }
 0x45c   :  { %v1884_v54 = vpop.permute.xlu1 %1883 }
 0x45d   :  { %1929 = vst.msk [vmem:[%s3709_s11 + $0x18] sm:$0xff] %vm1925_vm6, %v1884_v54  ;;  %v1423_v9 = vmul.f32 %v3168_v57, %v1403_v28  ;;  %v1906_v10 = vpop.permute.xlu2 %1905 }
 0x45e   :  { %1940 = vst.msk [vmem:[%s3709_s11 + $0x70] sm:$0xff] %vm1925_vm6, %v1906_v10 }
 0x45f   :  { %v1461_v4 = vsel %vm62_vm0, %v1423_v9, 0.0 }
 0x460   :  { %v1380_v25 = vpop.f32.mrf.mxu3  ;;  %1462 = vadd.xlane.f32.xlu1 %v1461_v4 }
 0x461   :  { %v1381_v46 = vadd.f32 %v3157_v56, %v1380_v25 }
 0x463   :  { %v1404_v40 = vmax.f32 %v1381_v46, 0.0 }
 0x464   :  { %v1890_v39 = vpop.permute.xlu1 %1889 }
 0x465   :  { %1932 = vst.msk [vmem:[%s3709_s11 + $0x30] sm:$0xff] %vm1925_vm6, %v1890_v39  ;;  %v1424_v19 = vmul.f32 %v3168_v57, %v1404_v40 }
 0x467   :  { %v1464_v2 = vsel %vm62_vm0, %v1424_v19, 0.0 }
 0x468   :  { %1465 = vadd.xlane.f32.xlu2 %v1464_v2 }
 0x46a   :  { %v1430_v16 = vpop.xlane.xlu0 %1429 }
 0x46b   :  { %v1476_v22 = vadd.f32 %v3168_v57, %v1430_v16  ;;  %v1383_v6 = vpop.f32.mrf.mxu3 }
 0x46c   :  { %v1896_v58 = vpop.permute.xlu1 %1895  ;;  %v1384_v23 = vadd.f32 %v3157_v56, %v1383_v6 }
 0x46d   :  { %v2124_v0 = vmul.f32 -1.442695, %v1476_v22  ;;  %1935 = vst.msk [vmem:[%s3709_s11 + $0x48] sm:$0xff] %vm1925_vm6, %v1896_v58 }
 0x46e   :  { %v1405_v3 = vmax.f32 %v1384_v23, 0.0 }
 0x46f   :  { %2273 = vpow2.f32 %v2124_v0 }
 0x470   :  { %v1425_v61 = vmul.f32 %v3168_v57, %v1405_v3 }
 0x472   :  { %v1467_v60 = vsel %vm62_vm0, %v1425_v61, 0.0  ;;  %v1442_v34 = vpop.xlane.xlu0 %1441 }
 0x473   :  { %1468 = vadd.xlane.f32.xlu0 %v1467_v60  ;;  %v1480_v59 = vadd.f32 %v3168_v57, %v1442_v34 }
 0x474   :  { %v1902_v1 = vpop.permute.xlu1 %1901 }
 0x475   :  { %v2274_v36 = vpop.eup %2273  ;;  %1938 = vst.msk [vmem:[%s3709_s11 + $0x60] sm:$0xff] %vm1925_vm6, %v1902_v1  ;;  %v2128_v8 = vmul.f32 -1.442695, %v1480_v59 }
 0x476   :  { %v1540_v15 = vadd.f32 1.0, %v2274_v36 }
 0x478   :  { %2275 = vrcp.f32 %v1540_v15  ;;  %v1567_v13 = vand.u32 2147483648, %v1540_v15  ;;  %v1565_v26 = vand.u32 2147483647, %v1540_v15  ;;  %vm1561_vm8 = vweird.f32 %v1540_v15 }
 0x479   :  { %2277 = vpow2.f32 %v2128_v8 }
 0x47a   :  { %v1568_v41 = vor.u32 1.1754944e-38, %v1567_v13  ;;  %vm1566_vm10 = vcmp.eq.f32.partialorder %v1565_v26, 8.507059e+37  ;;  %v1451_v29 = vpop.xlane.xlu0 %1450 }
 0x47b   :  { %v1483_v32 = vadd.f32 %v3168_v57, %v1451_v29 }
 0x47c   :  { %v1908_v30 = vpop.permute.xlu1 %1907 }
 0x47d   :  { %1941 = vst.msk [vmem:[%s3709_s11 + $0x78] sm:$0xff] %vm1925_vm6, %v1908_v30  ;;  %v2131_v47 = vmul.f32 -1.442695, %v1483_v32 }
 0x47e   :  { %v2276_v33 = vpop.eup %2275 }
 0x47f   :  { %v1557_v31 = vmul.f32 %v2276_v33, %v1540_v15  ;;  %vm1562_vm7 = vweird.f32 %v2276_v33  ;;  %v2278_v63 = vpop.eup %2277 }
 0x480   :  { %vm1563_vm9 = vmor %vm1561_vm8, %vm1562_vm7  ;;  %v3362_v5 = vadd.f32 1.0, %v2278_v63 }
 0x481   :  { %v1558_v49 = vsub.f32 1.0, %v1557_v31 }
 0x482   :  { %v1625_v63 = vand.u32 2147483647, %v3362_v5  ;;  %vm1621_vm7 = vweird.f32 %v3362_v5 }
 0x483   :  { %v1559_v55 = vmul.f32 %v2276_v33, %v1558_v49 }
 0x485   :  { %v1560_v35 = vadd.f32 %v2276_v33, %v1559_v55 }
 0x487   :  { %v1564_v42 = vsel %vm1563_vm9, %v2276_v33, %v1560_v35 }
 0x488   :  { %v1569_v50 = vsel %vm1566_vm10, %v1568_v41, %v1564_v42 }
 0x489   :  { %1958 = vrot.lane.b32.xlu0 %v1569_v50, %s2345_s28 }
 0x49f   :  { %v1436_v38 = vpop.xlane.xlu2 %1435 }
 0x4a0   :  { %v1478_v44 = vadd.f32 %v3168_v57, %v1436_v38 }
 0x4a2   :  { %v2126_v53 = vmul.f32 -1.442695, %v1478_v44 }
 0x4a4   :  { %2279 = vpow2.f32 %v2126_v53 }
 0x4a5   :  { %2281 = vpow2.f32 %v2131_v47 }
 0x4a6   :  { %2283 = vrcp.f32 %v3362_v5 }
 0x4a7   :  { %v1433_v11 = vpop.xlane.xlu1 %1432  ;;  %v1439_v52 = vpop.xlane.xlu2 %1438 }
 0x4a8   :  { %v1477_v14 = vadd.f32 %v3168_v57, %v1433_v11  ;;  %v1386_v45 = vpop.f32.mrf.mxu3  ;;  %v1479_v7 = vadd.f32 %v3168_v57, %v1439_v52 }
 0x4a9   :  { %v1387_v51 = vadd.f32 %v3157_v56, %v1386_v45 }
 0x4aa   :  { %v2125_v37 = vmul.f32 -1.442695, %v1477_v14  ;;  %v2280_v12 = vpop.eup %2279  ;;  %v2127_v43 = vmul.f32 -1.442695, %v1479_v7 }
 0x4ab   :  { %v1406_v20 = vmax.f32 %v1387_v51, 0.0  ;;  %v2282_v24 = vpop.eup %2281  ;;  %v3368_v17 = vadd.f32 1.0, %v2280_v12 }
 0x4ac   :  { %2285 = vpow2.f32 %v2125_v37  ;;  %v3372_v18 = vadd.f32 1.0, %v2282_v24  ;;  %v3376_v9 = vpop.eup %2283 }
 0x4ad   :  { %2287 = vpow2.f32 %v2127_v43  ;;  %v1426_v21 = vmul.f32 %v3168_v57, %v1406_v20  ;;  %v1617_v58 = vmul.f32 %v3376_v9, %v3362_v5  ;;  %v1595_v29 = vand.u32 2147483647, %v3368_v17 }
 0x4ae   :  { %2289 = vrcp.f32 %v3368_v17  ;;  %vm1591_vm12 = vweird.f32 %v3368_v17  ;;  %v1597_v14 = vand.u32 2147483648, %v3368_v17  ;;  %vm1622_vm4 = vweird.f32 %v3376_v9 }
 0x4af   :  { %v1445_v27 = vpop.xlane.xlu1 %1444  ;;  %v1470_v62 = vsel %vm62_vm0, %v1426_v21, 0.0  ;;  %v1448_v28 = vpop.xlane.xlu2 %1447  ;;  %2291 = vrcp.f32 %v3372_v18  ;;  %v1618_v33 = vsub.f32 1.0, %v1617_v58  ;;  %vm3432_vm15 = vcmp.eq.f32.partialorder %v1595_v29, 8.507059e+37 }
 0x4b0   :  { %v1481_v48 = vadd.f32 %v3168_v57, %v1445_v27  ;;  %v1389_v54 = vpop.f32.mrf.mxu3  ;;  %1471 = vadd.xlane.f32.xlu1 %v1470_v62  ;;  %v1482_v10 = vadd.f32 %v3168_v57, %v1448_v28 }
 0x4b1   :  { %v1390_v4 = vadd.f32 %v3157_v56, %v1389_v54  ;;  %v1619_v34 = vmul.f32 %v3376_v9, %v1618_v33 }
 0x4b2   :  { %v2286_v25 = vpop.eup %2285  ;;  %v2129_v46 = vmul.f32 -1.442695, %v1481_v48  ;;  %v2130_v19 = vmul.f32 -1.442695, %v1482_v10  ;;  %v1598_v10 = vor.u32 1.1754944e-38, %v1597_v14  ;;  %v1627_v14 = vand.u32 2147483648, %v3362_v5 }
 0x4b3   :  { %v2288_v40 = vpop.eup %2287  ;;  %v3381_v39 = vadd.f32 1.0, %v2286_v25  ;;  %v1407_v2 = vmax.f32 %v1390_v4, 0.0  ;;  %v3419_v52 = vadd.f32 %v3376_v9, %v1619_v34 }
 0x4b4   :  { %v3383_v16 = vpop.eup %2289  ;;  %v1543_v22 = vadd.f32 1.0, %v2288_v40  ;;  %2293 = vpow2.f32 %v2129_v46 }
 0x4b5   :  { %2295 = vrcp.f32 %v3381_v39  ;;  %v1427_v6 = vmul.f32 %v3168_v57, %v1407_v2  ;;  %v1587_v56 = vmul.f32 %v3383_v16, %v3368_v17  ;;  %v3393_v60 = vpop.eup %2291  ;;  %v1580_v4 = vand.u32 2147483647, %v3381_v39 }
 0x4b6   :  { %2297 = vrcp.f32 %v1543_v22  ;;  %v3409_v59 = vmul.f32 %v3393_v60, %v3372_v18  ;;  %v1610_v32 = vand.u32 2147483647, %v1543_v22  ;;  %v1612_v38 = vand.u32 2147483648, %v1543_v22 }
 0x4b7   :  { %2299 = vpow2.f32 %v2130_v19  ;;  %v1454_v23 = vpop.xlane.xlu1 %1453  ;;  %v1473_v0 = vsel %vm62_vm0, %v1427_v6, 0.0  ;;  %v1457_v61 = vpop.xlane.xlu2 %1456  ;;  %v1588_v36 = vsub.f32 1.0, %v1587_v56  ;;  %vm1592_vm0 = vweird.f32 %v3383_v16 }
 0x4b8   :  { %v1484_v3 = vadd.f32 %v3168_v57, %v1454_v23  ;;  %1474 = vadd.xlane.f32.xlu2 %v1473_v0  ;;  %v1485_v1 = vadd.f32 %v3168_v57, %v1457_v61  ;;  %v1663_v45 = vsub.f32 1.0, %v3409_v59  ;;  %vm1606_vm13 = vweird.f32 %v1543_v22  ;;  %vm3428_vm14 = vmor %vm1591_vm12, %vm1592_vm0 }
 0x4b9   :  { %v1589_v42 = vmul.f32 %v3383_v16, %v1588_v36  ;;  %vm1611_vm2 = vcmp.eq.f32.partialorder %v1610_v32, 8.507059e+37  ;;  %v1613_v24 = vor.u32 1.1754944e-38, %v1612_v38  ;;  %v1582_v40 = vand.u32 2147483648, %v3381_v39 }
 0x4ba   :  { %v2294_v15 = vpop.eup %2293  ;;  %v2132_v30 = vmul.f32 -1.442695, %v1484_v3  ;;  %v2133_v13 = vmul.f32 -1.442695, %v1485_v1  ;;  %vm1576_vm6 = vweird.f32 %v3381_v39  ;;  %vm3468_vm9 = vcmp.eq.f32.partialorder %v1580_v4, 8.507059e+37 }
 0x4bb   :  { %v3396_v31 = vpop.eup %2295  ;;  %v3398_v49 = vadd.f32 1.0, %v2294_v15  ;;  %v1590_v53 = vadd.f32 %v3383_v16, %v1589_v42  ;;  %v1583_v15 = vor.u32 1.1754944e-38, %v1582_v40  ;;  %v1670_v40 = vand.u32 2147483647, %v3372_v18 }
 0x4bc   :  { %v2298_v55 = vpop.eup %2297  ;;  %2301 = vpow2.f32 %v2132_v30  ;;  %v1572_v26 = vmul.f32 %v3396_v31, %v3381_v39  ;;  %vm1577_vm3 = vweird.f32 %v3396_v31 }
 0x4bd   :  { %v2300_v35 = vpop.eup %2299  ;;  %2303 = vrcp.f32 %v3398_v49  ;;  %v1602_v41 = vmul.f32 %v2298_v55, %v1543_v22  ;;  %vm1607_vm11 = vweird.f32 %v2298_v55  ;;  %v1594_v48 = vsel %vm3428_vm14, %v3383_v16, %v1590_v53  ;;  %vm3464_vm8 = vmor %vm1576_vm6, %vm1577_vm3 }
 0x4be   :  { %v3404_v50 = vadd.f32 1.0, %v2300_v35  ;;  %2305 = vpow2.f32 %v2133_v13  ;;  %v1573_v44 = vsub.f32 1.0, %v1572_v26  ;;  %vm1608_vm1 = vmor %vm1606_vm13, %vm1607_vm11  ;;  %v1599_v19 = vsel %vm3432_vm15, %v1598_v10, %v1594_v48 }
 0x4bf   :  { %v1603_v8 = vsub.f32 1.0, %v1602_v41  ;;  %v1640_v6 = vand.u32 2147483647, %v3398_v49  ;;  %v1642_v56 = vand.u32 2147483648, %v3398_v49  ;;  %vm1636_vm10 = vweird.f32 %v3398_v49  ;;  %vm3508_vm3 = vmor %vm1621_vm7, %vm1622_vm4 }
 0x4c0   :  { %2307 = vrcp.f32 %v3404_v50  ;;  %v1574_v17 = vmul.f32 %v3396_v31, %v1573_v44  ;;  %v1657_v58 = vand.u32 2147483648, %v3404_v50  ;;  %v1655_v36 = vand.u32 2147483647, %v3404_v50 }
 0x4c1   :  { %v1604_v47 = vmul.f32 %v2298_v55, %v1603_v8  ;;  %vm1651_vm12 = vweird.f32 %v3404_v50  ;;  %vm1641_vm13 = vcmp.eq.f32.partialorder %v1640_v6, 8.507059e+37  ;;  %v1643_v41 = vor.u32 1.1754944e-38, %v1642_v56 }
 0x4c2   :  { %v2302_v11 = vpop.eup %2301  ;;  %v1575_v2 = vadd.f32 %v3396_v31, %v1574_v17  ;;  %v1658_v34 = vor.u32 1.1754944e-38, %v1657_v58  ;;  %vm1656_vm15 = vcmp.eq.f32.partialorder %v1655_v36, 8.507059e+37 }
 0x4c3   :  { %v3422_v7 = vpop.eup %2303  ;;  %v3424_v51 = vadd.f32 1.0, %v2302_v11  ;;  %v1605_v37 = vadd.f32 %v2298_v55, %v1604_v47 }
 0x4c4   :  { %v2306_v20 = vpop.eup %2305  ;;  %v1632_v21 = vmul.f32 %v3422_v7, %v3398_v49  ;;  %vm1637_vm5 = vweird.f32 %v3422_v7  ;;  %v1579_v49 = vsel %vm3464_vm8, %v3396_v31, %v1575_v2  ;;  %vm1626_vm8 = vcmp.eq.f32.partialorder %v1625_v63, 8.507059e+37 }
 0x4c5   :  { %2309 = vrcp.f32 %v3424_v51  ;;  %v3441_v27 = vadd.f32 1.0, %v2306_v20  ;;  %v1609_v62 = vsel %vm1608_vm1, %v2298_v55, %v1605_v37  ;;  %vm3479_vm11 = vmor %vm1636_vm10, %vm1637_vm5  ;;  %v1584_v32 = vsel %vm3468_vm9, %v1583_v15, %v1579_v49 }
 0x4c6   :  { %v2308_v28 = vpop.eup %2307  ;;  %v1614_v54 = vsel %vm1611_vm2, %v1613_v24, %v1609_v62  ;;  %v1633_v25 = vsub.f32 1.0, %v1632_v21  ;;  %v1687_v43 = vand.u32 2147483648, %v3424_v51  ;;  %v1624_v24 = vsel %vm3508_vm3, %v3376_v9, %v3419_v52 }
 0x4c7   :  { %2311 = vrcp.f32 %v3441_v27  ;;  %1964 = vrot.lane.b32.xlu0 %v1614_v54, %s2345_s28  ;;  %v1647_v46 = vmul.f32 %v2308_v28, %v3404_v50  ;;  %vm1652_vm0 = vweird.f32 %v2308_v28  ;;  %v1700_v53 = vand.u32 2147483647, %v3441_v27 }
 0x4c8   :  { %v1634_v16 = vmul.f32 %v3422_v7, %v1633_v25  ;;  %vm1653_vm14 = vmor %vm1651_vm12, %vm1652_vm0  ;;  %v1702_v11 = vand.u32 2147483648, %v3441_v27  ;;  %vm1681_vm5 = vweird.f32 %v3424_v51  ;;  %v1685_v17 = vand.u32 2147483647, %v3424_v51 }
 0x4c9   :  { %1962 = vrot.lane.b32.xlu1 %v1599_v19, %s2345_s28  ;;  %v1648_v22 = vsub.f32 1.0, %v1647_v46  ;;  %vm1696_vm4 = vweird.f32 %v3441_v27  ;;  %v1628_v9 = vor.u32 1.1754944e-38, %v1627_v14  ;;  %vm1701_vm9 = vcmp.eq.f32.partialorder %v1700_v53, 8.507059e+37 }
 0x4ca   :  { %v1635_v3 = vadd.f32 %v3422_v7, %v1634_v16  ;;  %v1703_v54 = vor.u32 1.1754944e-38, %v1702_v11  ;;  %v1688_v4 = vor.u32 1.1754944e-38, %v1687_v43  ;;  %vm1686_vm10 = vcmp.eq.f32.partialorder %v1685_v17, 8.507059e+37 }
 0x4cb   :  { %v3474_v39 = vpop.eup %2309  ;;  %v1460_v61 = vpop.xlane.xlu0 %1459  ;;  %v1649_v1 = vmul.f32 %v2308_v28, %v1648_v22  ;;  %v1629_v59 = vsel %vm1626_vm8, %v1628_v9, %v1624_v24  ;;  %vm1667_vm0 = vweird.f32 %v3393_v60  ;;  %v1672_v63 = vand.u32 2147483648, %v3372_v18 }
 0x4cc   :  { %v1486_v33 = vadd.f32 %v3168_v57, %v1460_v61  ;;  %v1639_v13 = vsel %vm3479_vm11, %v3422_v7, %v1635_v3  ;;  %v1677_v55 = vmul.f32 %v3474_v39, %v3424_v51  ;;  %vm1682_vm1 = vweird.f32 %v3474_v39 }
 0x4cd   :  { %v2312_v26 = vpop.eup %2311  ;;  %v1650_v35 = vadd.f32 %v2308_v28, %v1649_v1  ;;  %v1644_v38 = vsel %vm1641_vm13, %v1643_v41, %v1639_v13  ;;  %vm3522_vm6 = vmor %vm1681_vm5, %vm1682_vm1  ;;  %vm1666_vm11 = vweird.f32 %v3372_v18  ;;  %v1673_v22 = vor.u32 1.1754944e-38, %v1672_v63 }
 0x4ce   :  { %v2134_v42 = vmul.f32 -1.442695, %v1486_v33  ;;  %v1692_v8 = vmul.f32 %v2312_v26, %v3441_v27  ;;  %v1678_v29 = vsub.f32 1.0, %v1677_v55  ;;  %vm1697_vm2 = vweird.f32 %v2312_v26  ;;  %vm1668_vm12 = vmor %vm1666_vm11, %vm1667_vm0 }
 0x4cf   :  { %v1654_v31 = vsel %vm1653_vm14, %v2308_v28, %v1650_v35  ;;  %v1664_v28 = vmul.f32 %v3393_v60, %v1663_v45  ;;  %vm1698_vm7 = vmor %vm1696_vm4, %vm1697_vm2  ;;  %vm1671_vm13 = vcmp.eq.f32.partialorder %v1670_v40, 8.507059e+37  ;;  %vm2006_vm0 = vcmask 56368  }
 0x4d0   :  { %2313 = vpow2.f32 %v2134_v42  ;;  %v1659_v44 = vsel %vm1656_vm15, %v1658_v34, %v1654_v31  ;;  %1960 = vrot.lane.b32.xlu2 %v1584_v32, %s2345_s28  ;;  %v1693_v47 = vsub.f32 1.0, %v1692_v8  ;;  %v1679_v50 = vmul.f32 %v3474_v39, %v1678_v29 }
 0x4d1   :  { %1970 = vrot.lane.b32.xlu0 %v1659_v44, %s2345_s28  ;;  %1968 = vrot.lane.b32.xlu1 %v1644_v38, %s2345_s28  ;;  %v1665_v5 = vadd.f32 %v3393_v60, %v1664_v28  ;;  %vm2023_vm11 = vcmask 64568   ;;  %v2346_v28 = vmov 0.0  }
 0x4d2   :  { %v1694_v7 = vmul.f32 %v2312_v26, %v1693_v47  ;;  %v1680_v12 = vadd.f32 %v3474_v39, %v1679_v50 }
 0x4d3   :  { %v1463_v20 = vpop.xlane.xlu1 %1462  ;;  %v1669_v16 = vsel %vm1668_vm12, %v3393_v60, %v1665_v5 }
 0x4d4   :  { %v1487_v21 = vadd.f32 %v3168_v57, %v1463_v20  ;;  %v1695_v62 = vadd.f32 %v2312_v26, %v1694_v7  ;;  %v1684_v52 = vsel %vm3522_vm6, %v3474_v39, %v1680_v12  ;;  %v1674_v0 = vsel %vm1671_vm13, %v1673_v22, %v1669_v16 }
 0x4d5   :  { %v1689_v45 = vsel %vm1686_vm10, %v1688_v4, %v1684_v52 }
 0x4d6   :  { %v2314_v51 = vpop.eup %2313  ;;  %v2135_v27 = vmul.f32 -1.442695, %v1487_v21  ;;  %v1699_v10 = vsel %vm1698_vm7, %v2312_v26, %v1695_v62 }
 0x4d7   :  { %v1550_v25 = vadd.f32 1.0, %v2314_v51  ;;  %v1704_v46 = vsel %vm1701_vm9, %v1703_v54, %v1699_v10 }
 0x4d8   :  { %2315 = vpow2.f32 %v2135_v27  ;;  %1966 = vrot.lane.b32.xlu2 %v1629_v59, %s2345_s28 }
 0x4d9   :  { %2317 = vrcp.f32 %v1550_v25  ;;  %1976 = vrot.lane.b32.xlu0 %v1704_v46, %s2345_s28  ;;  %1974 = vrot.lane.b32.xlu1 %v1689_v45, %s2345_s28  ;;  %v1717_v18 = vand.u32 2147483648, %v1550_v25  ;;  %v1715_v1 = vand.u32 2147483647, %v1550_v25  ;;  %vm1711_vm15 = vweird.f32 %v1550_v25 }
 0x4db   :  { %v1466_v19 = vpop.xlane.xlu2 %1465  ;;  %v1718_v13 = vor.u32 1.1754944e-38, %v1717_v18  ;;  %vm1716_vm2 = vcmp.eq.f32.partialorder %v1715_v1, 8.507059e+37 }
 0x4dc   :  { %v1488_v2 = vadd.f32 %v3168_v57, %v1466_v19 }
 0x4de   :  { %v2316_v6 = vpop.eup %2315  ;;  %v2136_v56 = vmul.f32 -1.442695, %v1488_v2 }
 0x4df   :  { %v2318_v58 = vpop.eup %2317  ;;  %v1551_v23 = vadd.f32 1.0, %v2316_v6 }
 0x4e0   :  { %2319 = vpow2.f32 %v2136_v56  ;;  %1972 = vrot.lane.b32.xlu2 %v1674_v0, %s2345_s28  ;;  %v1707_v3 = vmul.f32 %v2318_v58, %v1550_v25  ;;  %vm1712_vm14 = vweird.f32 %v2318_v58 }
 0x4e1   :  { %2321 = vrcp.f32 %v1551_v23  ;;  %vm1713_vm1 = vmor %vm1711_vm15, %vm1712_vm14  ;;  %v1732_v34 = vand.u32 2147483648, %v1551_v23  ;;  %v1730_v29 = vand.u32 2147483647, %v1551_v23  ;;  %vm1726_vm5 = vweird.f32 %v1551_v23 }
 0x4e2   :  { %v1708_v39 = vsub.f32 1.0, %v1707_v3 }
 0x4e3   :  { %v1733_v38 = vor.u32 1.1754944e-38, %v1732_v34  ;;  %vm1731_vm6 = vcmp.eq.f32.partialorder %v1730_v29, 8.507059e+37 }
 0x4e4   :  { %v1709_v61 = vmul.f32 %v2318_v58, %v1708_v39 }
 0x4e6   :  { %v2320_v36 = vpop.eup %2319  ;;  %v1469_v15 = vpop.xlane.xlu0 %1468  ;;  %v1710_v60 = vadd.f32 %v2318_v58, %v1709_v61 }
 0x4e7   :  { %v2322_v30 = vpop.eup %2321  ;;  %v1552_v33 = vadd.f32 1.0, %v2320_v36  ;;  %v1489_v49 = vadd.f32 %v3168_v57, %v1469_v15 }
 0x4e8   :  { %v1714_v55 = vsel %vm1713_vm1, %v2318_v58, %v1710_v60  ;;  %v1722_v26 = vmul.f32 %v2322_v30, %v1551_v23  ;;  %vm1727_vm3 = vweird.f32 %v2322_v30 }
 0x4e9   :  { %2323 = vrcp.f32 %v1552_v33  ;;  %v2137_v35 = vmul.f32 -1.442695, %v1489_v49  ;;  %v1719_v41 = vsel %vm1716_vm2, %v1718_v13, %v1714_v55  ;;  %vm1728_vm4 = vmor %vm1726_vm5, %vm1727_vm3  ;;  %v1747_v7 = vand.u32 2147483648, %v1552_v33 }
 0x4ea   :  { %1978 = vrot.lane.b32.xlu2 %v1719_v41, %s2345_s28  ;;  %v1723_v42 = vsub.f32 1.0, %v1722_v26  ;;  %v1745_v12 = vand.u32 2147483647, %v1552_v33  ;;  %vm1741_vm8 = vweird.f32 %v1552_v33 }
 0x4eb   :  { %2325 = vpow2.f32 %v2137_v35  ;;  %v1748_v20 = vor.u32 1.1754944e-38, %v1747_v7 }
 0x4ec   :  { %v1724_v8 = vmul.f32 %v2322_v30, %v1723_v42  ;;  %vm1746_vm10 = vcmp.eq.f32.partialorder %v1745_v12, 8.507059e+37 }
 0x4ee   :  { %v1725_v31 = vadd.f32 %v2322_v30, %v1724_v8 }
 0x4ef   :  { %v2324_v32 = vpop.eup %2323 }
 0x4f0   :  { %v1729_v44 = vsel %vm1728_vm4, %v2322_v30, %v1725_v31  ;;  %v1737_v47 = vmul.f32 %v2324_v32, %v1552_v33  ;;  %vm1742_vm7 = vweird.f32 %v2324_v32 }
 0x4f1   :  { %v2326_v50 = vpop.eup %2325  ;;  %v1734_v53 = vsel %vm1731_vm6, %v1733_v38, %v1729_v44  ;;  %vm1743_vm9 = vmor %vm1741_vm8, %vm1742_vm7 }
 0x4f2   :  { %v1553_v11 = vadd.f32 1.0, %v2326_v50  ;;  %1980 = vrot.lane.b32.xlu1 %v1734_v53, %s2345_s28  ;;  %v1738_v14 = vsub.f32 1.0, %v1737_v47 }
 0x4f4   :  { %2327 = vrcp.f32 %v1553_v11  ;;  %v1739_v37 = vmul.f32 %v2324_v32, %v1738_v14  ;;  %v1762_v9 = vand.u32 2147483648, %v1553_v11  ;;  %v1760_v51 = vand.u32 2147483647, %v1553_v11 }
 0x4f5   :  { %vm1756_vm13 = vweird.f32 %v1553_v11 }
 0x4f6   :  { %v1740_v43 = vadd.f32 %v2324_v32, %v1739_v37  ;;  %v1763_v10 = vor.u32 1.1754944e-38, %v1762_v9  ;;  %vm1761_vm15 = vcmp.eq.f32.partialorder %v1760_v51, 8.507059e+37 }
 0x4f8   :  { %v1744_v24 = vsel %vm1743_vm9, %v2324_v32, %v1740_v43 }
 0x4f9   :  { %v1749_v17 = vsel %vm1746_vm10, %v1748_v20, %v1744_v24 }
 0x4fa   :  { %v2328_v21 = vpop.eup %2327  ;;  %1982 = vrot.lane.b32.xlu0 %v1749_v17, %s2345_s28 }
 0x4fb   :  { %v1959_v62 = vpop.permute.xlu0 %1958  ;;  %v1752_v48 = vmul.f32 %v2328_v21, %v1553_v11  ;;  %vm1757_vm12 = vweird.f32 %v2328_v21 }
 0x4fc   :  { %2007 = vst.msk [vmem:[%s3709_s11] sm:$0xff] %vm2006_vm0, %v1959_v62  ;;  %vm1758_vm14 = vmor %vm1756_vm13, %vm1757_vm12 }
 0x4fd   :  { %2024 = vst.msk [vmem:[%s3709_s11] sm:$0xff] %vm2023_vm11, %v2346_v28  ;;  %v1753_v54 = vsub.f32 1.0, %v1752_v48 }
 0x4ff   :  { %v1754_v52 = vmul.f32 %v2328_v21, %v1753_v54 }
 0x501   :  { %v1755_v27 = vadd.f32 %v2328_v21, %v1754_v52 }
 0x503   :  { %v1759_v4 = vsel %vm1758_vm14, %v2328_v21, %v1755_v27 }
 0x504   :  { %v1764_v25 = vsel %vm1761_vm15, %v1763_v10, %v1759_v4 }
 0x505   :  { %1984 = vrot.lane.b32.xlu2 %v1764_v25, %s2345_s28 }
 0x523   :  { %v1472_v46 = vpop.xlane.xlu1 %1471 }
 0x524   :  { %v1490_v59 = vadd.f32 %v3168_v57, %v1472_v46 }
 0x526   :  { %v2138_v45 = vmul.f32 -1.442695, %v1490_v59 }
 0x528   :  { %2329 = vpow2.f32 %v2138_v45 }
 0x52b   :  { %v1475_v5 = vpop.xlane.xlu2 %1474 }
 0x52c   :  { %v1491_v63 = vadd.f32 %v3168_v57, %v1475_v5 }
 0x52e   :  { %v2330_v40 = vpop.eup %2329  ;;  %v2139_v19 = vmul.f32 -1.442695, %v1491_v63 }
 0x52f   :  { %v1554_v2 = vadd.f32 1.0, %v2330_v40 }
 0x530   :  { %2331 = vpow2.f32 %v2139_v19 }
 0x531   :  { %2333 = vrcp.f32 %v1554_v2  ;;  %v1777_v39 = vand.u32 2147483648, %v1554_v2  ;;  %v1775_v61 = vand.u32 2147483647, %v1554_v2  ;;  %vm1771_vm2 = vweird.f32 %v1554_v2 }
 0x533   :  { %v1961_v16 = vpop.permute.xlu2 %1960  ;;  %v1778_v15 = vor.u32 1.1754944e-38, %v1777_v39  ;;  %vm1776_vm5 = vcmp.eq.f32.partialorder %v1775_v61, 8.507059e+37 }
 0x534   :  { %2008 = vst.msk [vmem:[%s3709_s11 + $0x8] sm:$0xff] %vm2006_vm0, %v1961_v16 }
 0x535   :  { %2025 = vst.msk [vmem:[%s3709_s11 + $0x8] sm:$0xff] %vm2023_vm11, %v2346_v28 }
 0x536   :  { %v2332_v22 = vpop.eup %2331 }
 0x537   :  { %v2334_v6 = vpop.eup %2333  ;;  %v1555_v57 = vadd.f32 1.0, %v2332_v22 }
 0x538   :  { %v1767_v56 = vmul.f32 %v2334_v6, %v1554_v2  ;;  %vm1772_vm1 = vweird.f32 %v2334_v6 }
 0x539   :  { %2335 = vrcp.f32 %v1555_v57  ;;  %v1965_v58 = vpop.permute.xlu0 %1964  ;;  %vm1773_vm3 = vmor %vm1771_vm2, %vm1772_vm1  ;;  %v1792_v26 = vand.u32 2147483648, %v1555_v57  ;;  %v1790_v42 = vand.u32 2147483647, %v1555_v57  ;;  %vm1786_vm6 = vweird.f32 %v1555_v57 }
 0x53a   :  { %2010 = vst.msk [vmem:[%s3709_s11 + $0x18] sm:$0xff] %vm2006_vm0, %v1965_v58  ;;  %v1768_v23 = vsub.f32 1.0, %v1767_v56 }
 0x53b   :  { %2027 = vst.msk [vmem:[%s3709_s11 + $0x18] sm:$0xff] %vm2023_vm11, %v2346_v28  ;;  %v1963_v0 = vpop.permute.xlu1 %1962  ;;  %v1967_v3 = vpop.permute.xlu2 %1966  ;;  %v1793_v8 = vor.u32 1.1754944e-38, %v1792_v26  ;;  %vm1791_vm8 = vcmp.eq.f32.partialorder %v1790_v42, 8.507059e+37 }
 0x53c   :  { %2009 = vst.msk [vmem:[%s3709_s11 + $0x10] sm:$0xff] %vm2006_vm0, %v1963_v0  ;;  %v1769_v18 = vmul.f32 %v2334_v6, %v1768_v23 }
 0x53d   :  { %2026 = vst.msk [vmem:[%s3709_s11 + $0x10] sm:$0xff] %vm2023_vm11, %v2346_v28 }
 0x53e   :  { %2011 = vst.msk [vmem:[%s3709_s11 + $0x20] sm:$0xff] %vm2006_vm0, %v1967_v3  ;;  %v1770_v1 = vadd.f32 %v2334_v6, %v1769_v18 }
 0x53f   :  { %v2336_v36 = vpop.eup %2335  ;;  %2028 = vst.msk [vmem:[%s3709_s11 + $0x20] sm:$0xff] %vm2023_vm11, %v2346_v28 }
 0x540   :  { %v1774_v60 = vsel %vm1773_vm3, %v2334_v6, %v1770_v1  ;;  %v1782_v30 = vmul.f32 %v2336_v36, %v1555_v57  ;;  %vm1787_vm4 = vweird.f32 %v2336_v36 }
 0x541   :  { %v1779_v33 = vsel %vm1776_vm5, %v1778_v15, %v1774_v60  ;;  %vm1788_vm7 = vmor %vm1786_vm6, %vm1787_vm4 }
 0x542   :  { %1986 = vrot.lane.b32.xlu1 %v1779_v33, %s2345_s28  ;;  %v1783_v49 = vsub.f32 1.0, %v1782_v30 }
 0x543   :  { %v1971_v13 = vpop.permute.xlu0 %1970  ;;  %v1969_v55 = vpop.permute.xlu1 %1968 }
 0x544   :  { %2013 = vst.msk [vmem:[%s3709_s11 + $0x30] sm:$0xff] %vm2006_vm0, %v1971_v13  ;;  %v1973_v35 = vpop.permute.xlu2 %1972  ;;  %v1784_v41 = vmul.f32 %v2336_v36, %v1783_v49 }
 0x545   :  { %2030 = vst.msk [vmem:[%s3709_s11 + $0x30] sm:$0xff] %vm2023_vm11, %v2346_v28 }
 0x546   :  { %2012 = vst.msk [vmem:[%s3709_s11 + $0x28] sm:$0xff] %vm2006_vm0, %v1969_v55  ;;  %v1785_v34 = vadd.f32 %v2336_v36, %v1784_v41 }
 0x547   :  { %2029 = vst.msk [vmem:[%s3709_s11 + $0x28] sm:$0xff] %vm2023_vm11, %v2346_v28 }
 0x548   :  { %2014 = vst.msk [vmem:[%s3709_s11 + $0x38] sm:$0xff] %vm2006_vm0, %v1973_v35  ;;  %v1789_v29 = vsel %vm1788_vm7, %v2336_v36, %v1785_v34 }
 0x549   :  { %2031 = vst.msk [vmem:[%s3709_s11 + $0x38] sm:$0xff] %vm2023_vm11, %v2346_v28  ;;  %v1794_v31 = vsel %vm1791_vm8, %v1793_v8, %v1789_v29 }
 0x54a   :  { %1988 = vrot.lane.b32.xlu0 %v1794_v31, %s2345_s28 }
 0x54b   :  { %v1977_v32 = vpop.permute.xlu0 %1976  ;;  %v1975_v38 = vpop.permute.xlu1 %1974 }
 0x54c   :  { %2016 = vst.msk [vmem:[%s3709_s11 + $0x48] sm:$0xff] %vm2006_vm0, %v1977_v32  ;;  %v1979_v44 = vpop.permute.xlu2 %1978 }
 0x54d   :  { %2033 = vst.msk [vmem:[%s3709_s11 + $0x48] sm:$0xff] %vm2023_vm11, %v2346_v28 }
 0x54e   :  { %2015 = vst.msk [vmem:[%s3709_s11 + $0x40] sm:$0xff] %vm2006_vm0, %v1975_v38 }
 0x54f   :  { %2032 = vst.msk [vmem:[%s3709_s11 + $0x40] sm:$0xff] %vm2023_vm11, %v2346_v28 }
 0x550   :  { %2017 = vst.msk [vmem:[%s3709_s11 + $0x50] sm:$0xff] %vm2006_vm0, %v1979_v44 }
 0x551   :  { %2034 = vst.msk [vmem:[%s3709_s11 + $0x50] sm:$0xff] %vm2023_vm11, %v2346_v28 }
 0x55f   :  { %v1985_v47 = vpop.permute.xlu2 %1984 }
 0x560   :  { %2020 = vst.msk [vmem:[%s3709_s11 + $0x68] sm:$0xff] %vm2006_vm0, %v1985_v47 }
 0x561   :  { %2037 = vst.msk [vmem:[%s3709_s11 + $0x68] sm:$0xff] %vm2023_vm11, %v2346_v28 }
 0x564   :  { %v1981_v50 = vpop.permute.xlu1 %1980 }
 0x565   :  { %2018 = vst.msk [vmem:[%s3709_s11 + $0x58] sm:$0xff] %vm2006_vm0, %v1981_v50 }
 0x566   :  { %2035 = vst.msk [vmem:[%s3709_s11 + $0x58] sm:$0xff] %vm2023_vm11, %v2346_v28 }
 0x56c   :  { %v1983_v53 = vpop.permute.xlu0 %1982 }
 0x56d   :  { %2019 = vst.msk [vmem:[%s3709_s11 + $0x60] sm:$0xff] %vm2006_vm0, %v1983_v53 }
 0x56e   :  { %2036 = vst.msk [vmem:[%s3709_s11 + $0x60] sm:$0xff] %vm2023_vm11, %v2346_v28 }
 0x5b4   :  { %v1987_v11 = vpop.permute.xlu1 %1986 }
 0x5b5   :  { %2021 = vst.msk [vmem:[%s3709_s11 + $0x70] sm:$0xff] %vm2006_vm0, %v1987_v11 }
 0x5b6   :  { %2038 = vst.msk [vmem:[%s3709_s11 + $0x70] sm:$0xff] %vm2023_vm11, %v2346_v28 }
 0x5bc   :  { %v1989_v14 = vpop.permute.xlu0 %1988 }
 0x5bd   :  { %2022 = vst.msk [vmem:[%s3709_s11 + $0x78] sm:$0xff] %vm2006_vm0, %v1989_v14 }
 0x5be   :  { %2039 = vst.msk [vmem:[%s3709_s11 + $0x78] sm:$0xff] %vm2023_vm11, %v2346_v28 }

</bundles_post_ra>
